<compile_context>
chip_gen: v5e
topology: v5e:2x2
jax: 0.10.0
libtpu: 0.0.40
codegen_flags: <defaults>
</compile_context>

<pallas_src>
import functools

import jax
import jax.numpy as jnp
import numpy as np
from jax.experimental import pallas as pl
from jax.experimental.pallas import tpu as pltpu

INPUT_DIM = 13
HIDDEN_DIM = 40
LAYER_DIM = 1          # kernel implements the single-layer case
OUTPUT_DIM = 10

GATE_PAD = 128         # each LSTM gate padded to a full 128-lane block
BATCH_PAD = 8          # batch rows padded to a full 8-sublane tile
OUT_PAD = 128          # fc output padded to a full 128-lane block


def _sigmoid_eup(x):
    """sigmoid(x) = 0.5*(tanh(x/2)+1): EUP transcendental, no VALU divide."""
    return 0.5 * jnp.tanh(0.5 * x) + 0.5


def _lstm_kernel(x_ref, w_ih_ref, w_hh_ref, b_ref, w_fc_ref, b_fc_ref,
                 out_ref, gx_ref, *, seq_len, batch_pad, hidden_pad):
    """Single invocation: hoisted input projection + serial recurrence + fc.

    x_ref:    (T*BP, D)   time-major rows (row = t*BP + b), batch padded to BP
    w_ih_ref: (D, 4*G)    gate g occupies lanes [g*G, g*G+H); other lanes zero
    w_hh_ref: (G, 4*G)    rows >= H zero; gate layout as above
    b_ref:    (1, 4*G)    b_ih + b_hh fused; padded lanes zero
    w_fc_ref: (G, O_pad)  rows >= H zero, cols >= 10 zero
    b_fc_ref: (1, O_pad)
    out_ref:  (BP, O_pad) lane-dense output slab (real rows/cols sliced outside)
    gx_ref:   (T*BP, 4*G) VMEM scratch holding the hoisted input projection
    """
    G = hidden_pad
    BP = batch_pad

    # ---- Hoisted input projection: one MXU call covers all timesteps, then
    # ---- spilled to VMEM scratch so the loop re-reads aligned 8-row slabs.
    gx_ref[...] = (jnp.dot(x_ref[...], w_ih_ref[...],
                           preferred_element_type=jnp.float32) + b_ref[...])

    w_hh = w_hh_ref[...]                                   # resident across steps

    h = jnp.zeros((BP, G), jnp.float32)
    c = jnp.zeros((BP, G), jnp.float32)

    # ---- Serial recurrence, fully unrolled (T is small and static). ----
    for t in range(seq_len):
        g_t = gx_ref[t * BP:(t + 1) * BP, :]               # aligned (8,128) tiles
        gates = g_t + jnp.dot(h, w_hh, preferred_element_type=jnp.float32)
        # Whole-vreg, lane-aligned gate slices (PyTorch gate order i, f, g, o).
        i_g = _sigmoid_eup(gates[:, 0 * G:1 * G])
        f_g = _sigmoid_eup(gates[:, 1 * G:2 * G])
        g_g = jnp.tanh(gates[:, 2 * G:3 * G])
        o_g = _sigmoid_eup(gates[:, 3 * G:4 * G])
        c = f_g * c + i_g * g_g
        h = o_g * jnp.tanh(c)
        # Padded lanes (H..G-1): preactivation is exactly 0 -> i=f=o=0.5, g=0,
        # so c and h stay 0 there. Padded batch rows produce throwaway h rows
        # that are sliced off by the wrapper.

    # ---- Final linear layer on the last hidden state (lane-dense store). ----
    out_ref[...] = (jnp.dot(h, w_fc_ref[...], preferred_element_type=jnp.float32)
                    + b_fc_ref[...]).astype(out_ref.dtype)


def prepare_kernel_params(params, gate_pad=GATE_PAD, out_pad=OUT_PAD):
    """One-time weight prep: transpose, fuse biases, pad gates/fc to 128 lanes."""
    H = params["w_hh"].shape[0] // 4
    D = params["w_ih"].shape[1]
    O = params["w_fc"].shape[0]
    G = gate_pad
    assert H <= G and O <= out_pad

    w_ih = np.asarray(params["w_ih"], np.float32)          # (4H, D), gates i,f,g,o
    w_hh = np.asarray(params["w_hh"], np.float32)          # (4H, H)
    b = np.asarray(params["b_ih"], np.float32) + np.asarray(params["b_hh"], np.float32)

    w_ih_p = np.zeros((D, 4 * G), np.float32)
    w_hh_p = np.zeros((G, 4 * G), np.float32)
    b_p = np.zeros((1, 4 * G), np.float32)
    for g in range(4):
        w_ih_p[:, g * G:g * G + H] = w_ih[g * H:(g + 1) * H, :].T
        w_hh_p[:H, g * G:g * G + H] = w_hh[g * H:(g + 1) * H, :].T
        b_p[0, g * G:g * G + H] = b[g * H:(g + 1) * H]

    w_fc_p = np.zeros((G, out_pad), np.float32)
    w_fc_p[:H, :O] = np.asarray(params["w_fc"], np.float32).T
    b_fc_p = np.zeros((1, out_pad), np.float32)
    b_fc_p[0, :O] = np.asarray(params["b_fc"], np.float32)

    return {
        "w_ih_p": jnp.asarray(w_ih_p),
        "w_hh_p": jnp.asarray(w_hh_p),
        "b_p": jnp.asarray(b_p),
        "w_fc_p": jnp.asarray(w_fc_p),
        "b_fc_p": jnp.asarray(b_fc_p),
    }


@functools.partial(jax.jit, static_argnames=("out_dim",))
def model_lstm_forward(x, kparams, out_dim=OUTPUT_DIM):
    """x: (B, T, input_dim) float32 (batch_first, like the PyTorch module)."""
    B, T, D = x.shape
    G = kparams["w_hh_p"].shape[0]
    O_pad = kparams["w_fc_p"].shape[1]
    BP = max(BATCH_PAD, ((B + 7) // 8) * 8)                # 8-sublane-aligned batch

    # Zero-pad batch, then time-major flattened rows (row = t*BP + b).
    x_p = jnp.pad(x, ((0, BP - B), (0, 0), (0, 0)))
    x_tm = jnp.transpose(x_p, (1, 0, 2)).reshape(T * BP, D)

    kernel = functools.partial(_lstm_kernel, seq_len=T, batch_pad=BP, hidden_pad=G)

    out_padded = pl.pallas_call(
        kernel,
        out_shape=jax.ShapeDtypeStruct((BP, O_pad), jnp.float32),
        in_specs=[pl.BlockSpec(memory_space=pltpu.MemorySpace.VMEM)] * 6,
        out_specs=pl.BlockSpec(memory_space=pltpu.MemorySpace.VMEM),
        scratch_shapes=[pltpu.VMEM((T * BP, 4 * G), jnp.float32)],
    )(x_tm, kparams["w_ih_p"], kparams["w_hh_p"], kparams["b_p"],
      kparams["w_fc_p"], kparams["b_fc_p"])

    # Only the real batch rows / output lanes are returned.
    return out_padded[:B, :out_dim]


def init_params(key, input_dim, hidden_dim, output_dim):
    """PyTorch-style uniform(-1/sqrt(H), 1/sqrt(H)) init, deterministic."""
    ks = jax.random.split(key, 6)
    k_lstm = 1.0 / np.sqrt(hidden_dim)
    k_fc = 1.0 / np.sqrt(hidden_dim)
    u = lambda k, shape, lim: jax.random.uniform(k, shape, jnp.float32, -lim, lim)
    return {
        "w_ih": u(ks[0], (4 * hidden_dim, input_dim), k_lstm),
        "w_hh": u(ks[1], (4 * hidden_dim, hidden_dim), k_lstm),
        "b_ih": u(ks[2], (4 * hidden_dim,), k_lstm),
        "b_hh": u(ks[3], (4 * hidden_dim,), k_lstm),
        "w_fc": u(ks[4], (output_dim, hidden_dim), k_fc),
        "b_fc": u(ks[5], (output_dim,), k_fc),
    }


def reference_forward(x, params):
    """Pure-JAX reference matching torch.nn.LSTM + Linear semantics."""
    H = params["w_hh"].shape[0] // 4
    B = x.shape[0]
    w_ih_t = params["w_ih"].T
    w_hh_t = params["w_hh"].T
    b = params["b_ih"] + params["b_hh"]

    def step(carry, x_t):
        h, c = carry
        gates = x_t @ w_ih_t + h @ w_hh_t + b
        i = jax.nn.sigmoid(gates[:, 0 * H:1 * H])
        f = jax.nn.sigmoid(gates[:, 1 * H:2 * H])
        g = jnp.tanh(gates[:, 2 * H:3 * H])
        o = jax.nn.sigmoid(gates[:, 3 * H:4 * H])
        c = f * c + i * g
        h = o * jnp.tanh(c)
        return (h, c), None

    h0 = jnp.zeros((B, H), jnp.float32)
    c0 = jnp.zeros((B, H), jnp.float32)
    (h_T, _), _ = jax.lax.scan(step, (h0, c0), jnp.transpose(x, (1, 0, 2)))
    return h_T @ params["w_fc"].T + params["b_fc"]


if __name__ == "__main__":
    key = jax.random.PRNGKey(0)
    k_x, k_p = jax.random.split(key)

    B, T = 2, 8
    x = jax.random.normal(k_x, (B, T, INPUT_DIM), jnp.float32)
    params = init_params(k_p, INPUT_DIM, HIDDEN_DIM, OUTPUT_DIM)

    # Weight prep happens ONCE; reused for every forward call.
    kparams = prepare_kernel_params(params)

    out = model_lstm_forward(x, kparams)
    out = jax.block_until_ready(out)

    ref = reference_forward(x, params)
    np.testing.assert_allclose(np.asarray(out), np.asarray(ref),
                               rtol=2e-5, atol=2e-5)

    assert out.shape == (B, OUTPUT_DIM)
    print("KERNEL_OK")
</pallas_src>

<mosaic_0001>
module attributes {stable_mosaic.version = 11 : i64} {
  func.func @_lstm_kernel(%arg0: memref<64x13xf32, #tpu.memory_space<vmem>>, %arg1: memref<13x512xf32, #tpu.memory_space<vmem>>, %arg2: memref<128x512xf32, #tpu.memory_space<vmem>>, %arg3: memref<1x512xf32, #tpu.memory_space<vmem>>, %arg4: memref<128x128xf32, #tpu.memory_space<vmem>>, %arg5: memref<1x128xf32, #tpu.memory_space<vmem>>, %arg6: memref<8x128xf32, #tpu.memory_space<vmem>>, %arg7: memref<64x512xf32, #tpu.memory_space<vmem>>) attributes {dimension_semantics = [], scalar_prefetch = 0 : i64, scratch_operands = 1 : i64, tpu.core_type = #tpu.core_type<tc>} {
    %c0 = arith.constant 0 : index
    %c0_0 = arith.constant 0 : index
    %0 = vector.load %arg0[%c0, %c0_0] : memref<64x13xf32, #tpu.memory_space<vmem>>, vector<64x13xf32>
    %c0_1 = arith.constant 0 : index
    %c0_2 = arith.constant 0 : index
    %1 = vector.load %arg1[%c0_1, %c0_2] : memref<13x512xf32, #tpu.memory_space<vmem>>, vector<13x512xf32>
    %cst = arith.constant dense<0.000000e+00> : vector<64x512xf32>
    %2 = tpu.matmul %0, %1, %cst {dimension_numbers = #tpu.dot_dimension_numbers<[1], [0], [0], [1], [0, 0, 1, 1], [], []>} : vector<64x13xf32>, vector<13x512xf32>, vector<64x512xf32> -> vector<64x512xf32>
    %c0_3 = arith.constant 0 : index
    %c0_4 = arith.constant 0 : index
    %3 = vector.load %arg3[%c0_3, %c0_4] : memref<1x512xf32, #tpu.memory_space<vmem>>, vector<1x512xf32>
    %4 = vector.broadcast %3 : vector<1x512xf32> to vector<64x512xf32>
    %5 = arith.addf %2, %4 : vector<64x512xf32>
    %c0_5 = arith.constant 0 : index
    %c0_6 = arith.constant 0 : index
    %6 = vector.load %arg7[%c0_5, %c0_6] : memref<64x512xf32, #tpu.memory_space<vmem>>, vector<64x512xf32>
    tpu.vector_store %arg7[%c0_5, %c0_6], %5 {strides = array<i32>} : memref<64x512xf32, #tpu.memory_space<vmem>>, vector<64x512xf32>,
    %c0_7 = arith.constant 0 : index
    %c0_8 = arith.constant 0 : index
    %7 = vector.load %arg2[%c0_7, %c0_8] : memref<128x512xf32, #tpu.memory_space<vmem>>, vector<128x512xf32>
    %cst_9 = arith.constant 0.000000e+00 : f32
    %8 = vector.broadcast %cst_9 : f32 to vector<8x128xf32>
    %cst_10 = arith.constant 0.000000e+00 : f32
    %9 = vector.broadcast %cst_10 : f32 to vector<8x128xf32>
    %c0_11 = arith.constant 0 : index
    %c0_12 = arith.constant 0 : index
    %10 = vector.load %arg7[%c0_11, %c0_12] : memref<64x512xf32, #tpu.memory_space<vmem>>, vector<8x512xf32>
    %cst_13 = arith.constant dense<0.000000e+00> : vector<8x512xf32>
    %11 = tpu.matmul %8, %7, %cst_13 {dimension_numbers = #tpu.dot_dimension_numbers<[1], [0], [0], [1], [0, 0, 1, 1], [], []>} : vector<8x128xf32>, vector<128x512xf32>, vector<8x512xf32> -> vector<8x512xf32>
    %12 = arith.addf %10, %11 : vector<8x512xf32>
    %13 = vector.extract_strided_slice %12 {offsets = [0, 0], sizes = [8, 128], strides = [1, 1]} : vector<8x512xf32> to vector<8x128xf32>
    %cst_14 = arith.constant 5.000000e-01 : f32
    %14 = vector.broadcast %cst_14 : f32 to vector<8x128xf32>
    %15 = arith.mulf %14, %13 : vector<8x128xf32>
    %16 = math.tanh %15 : vector<8x128xf32>
    %cst_15 = arith.constant 5.000000e-01 : f32
    %17 = vector.broadcast %cst_15 : f32 to vector<8x128xf32>
    %18 = arith.mulf %17, %16 : vector<8x128xf32>
    %cst_16 = arith.constant 5.000000e-01 : f32
    %19 = vector.broadcast %cst_16 : f32 to vector<8x128xf32>
    %20 = arith.addf %18, %19 : vector<8x128xf32>
    %21 = vector.extract_strided_slice %12 {offsets = [0, 128], sizes = [8, 128], strides = [1, 1]} : vector<8x512xf32> to vector<8x128xf32>
    %cst_17 = arith.constant 5.000000e-01 : f32
    %22 = vector.broadcast %cst_17 : f32 to vector<8x128xf32>
    %23 = arith.mulf %22, %21 : vector<8x128xf32>
    %24 = math.tanh %23 : vector<8x128xf32>
    %cst_18 = arith.constant 5.000000e-01 : f32
    %25 = vector.broadcast %cst_18 : f32 to vector<8x128xf32>
    %26 = arith.mulf %25, %24 : vector<8x128xf32>
    %cst_19 = arith.constant 5.000000e-01 : f32
    %27 = vector.broadcast %cst_19 : f32 to vector<8x128xf32>
    %28 = arith.addf %26, %27 : vector<8x128xf32>
    %29 = vector.extract_strided_slice %12 {offsets = [0, 256], sizes = [8, 128], strides = [1, 1]} : vector<8x512xf32> to vector<8x128xf32>
    %30 = math.tanh %29 : vector<8x128xf32>
    %31 = vector.extract_strided_slice %12 {offsets = [0, 384], sizes = [8, 128], strides = [1, 1]} : vector<8x512xf32> to vector<8x128xf32>
    %cst_20 = arith.constant 5.000000e-01 : f32
    %32 = vector.broadcast %cst_20 : f32 to vector<8x128xf32>
    %33 = arith.mulf %32, %31 : vector<8x128xf32>
    %34 = math.tanh %33 : vector<8x128xf32>
    %cst_21 = arith.constant 5.000000e-01 : f32
    %35 = vector.broadcast %cst_21 : f32 to vector<8x128xf32>
    %36 = arith.mulf %35, %34 : vector<8x128xf32>
    %cst_22 = arith.constant 5.000000e-01 : f32
    %37 = vector.broadcast %cst_22 : f32 to vector<8x128xf32>
    %38 = arith.addf %36, %37 : vector<8x128xf32>
    %39 = arith.mulf %28, %9 : vector<8x128xf32>
    %40 = arith.mulf %20, %30 : vector<8x128xf32>
    %41 = arith.addf %39, %40 : vector<8x128xf32>
    %42 = math.tanh %41 : vector<8x128xf32>
    %43 = arith.mulf %38, %42 : vector<8x128xf32>
    %c8 = arith.constant 8 : index
    %c0_23 = arith.constant 0 : index
    %44 = vector.load %arg7[%c8, %c0_23] : memref<64x512xf32, #tpu.memory_space<vmem>>, vector<8x512xf32>
    %cst_24 = arith.constant dense<0.000000e+00> : vector<8x512xf32>
    %45 = tpu.matmul %43, %7, %cst_24 {dimension_numbers = #tpu.dot_dimension_numbers<[1], [0], [0], [1], [0, 0, 1, 1], [], []>} : vector<8x128xf32>, vector<128x512xf32>, vector<8x512xf32> -> vector<8x512xf32>
    %46 = arith.addf %44, %45 : vector<8x512xf32>
    %47 = vector.extract_strided_slice %46 {offsets = [0, 0], sizes = [8, 128], strides = [1, 1]} : vector<8x512xf32> to vector<8x128xf32>
    %cst_25 = arith.constant 5.000000e-01 : f32
    %48 = vector.broadcast %cst_25 : f32 to vector<8x128xf32>
    %49 = arith.mulf %48, %47 : vector<8x128xf32>
    %50 = math.tanh %49 : vector<8x128xf32>
    %cst_26 = arith.constant 5.000000e-01 : f32
    %51 = vector.broadcast %cst_26 : f32 to vector<8x128xf32>
    %52 = arith.mulf %51, %50 : vector<8x128xf32>
    %cst_27 = arith.constant 5.000000e-01 : f32
    %53 = vector.broadcast %cst_27 : f32 to vector<8x128xf32>
    %54 = arith.addf %52, %53 : vector<8x128xf32>
    %55 = vector.extract_strided_slice %46 {offsets = [0, 128], sizes = [8, 128], strides = [1, 1]} : vector<8x512xf32> to vector<8x128xf32>
    %cst_28 = arith.constant 5.000000e-01 : f32
    %56 = vector.broadcast %cst_28 : f32 to vector<8x128xf32>
    %57 = arith.mulf %56, %55 : vector<8x128xf32>
    %58 = math.tanh %57 : vector<8x128xf32>
    %cst_29 = arith.constant 5.000000e-01 : f32
    %59 = vector.broadcast %cst_29 : f32 to vector<8x128xf32>
    %60 = arith.mulf %59, %58 : vector<8x128xf32>
    %cst_30 = arith.constant 5.000000e-01 : f32
    %61 = vector.broadcast %cst_30 : f32 to vector<8x128xf32>
    %62 = arith.addf %60, %61 : vector<8x128xf32>
    %63 = vector.extract_strided_slice %46 {offsets = [0, 256], sizes = [8, 128], strides = [1, 1]} : vector<8x512xf32> to vector<8x128xf32>
    %64 = math.tanh %63 : vector<8x128xf32>
    %65 = vector.extract_strided_slice %46 {offsets = [0, 384], sizes = [8, 128], strides = [1, 1]} : vector<8x512xf32> to vector<8x128xf32>
    %cst_31 = arith.constant 5.000000e-01 : f32
    %66 = vector.broadcast %cst_31 : f32 to vector<8x128xf32>
    %67 = arith.mulf %66, %65 : vector<8x128xf32>
    %68 = math.tanh %67 : vector<8x128xf32>
    %cst_32 = arith.constant 5.000000e-01 : f32
    %69 = vector.broadcast %cst_32 : f32 to vector<8x128xf32>
    %70 = arith.mulf %69, %68 : vector<8x128xf32>
    %cst_33 = arith.constant 5.000000e-01 : f32
    %71 = vector.broadcast %cst_33 : f32 to vector<8x128xf32>
    %72 = arith.addf %70, %71 : vector<8x128xf32>
    %73 = arith.mulf %62, %41 : vector<8x128xf32>
    %74 = arith.mulf %54, %64 : vector<8x128xf32>
    %75 = arith.addf %73, %74 : vector<8x128xf32>
    %76 = math.tanh %75 : vector<8x128xf32>
    %77 = arith.mulf %72, %76 : vector<8x128xf32>
    %c16 = arith.constant 16 : index
    %c0_34 = arith.constant 0 : index
    %78 = vector.load %arg7[%c16, %c0_34] : memref<64x512xf32, #tpu.memory_space<vmem>>, vector<8x512xf32>
    %cst_35 = arith.constant dense<0.000000e+00> : vector<8x512xf32>
    %79 = tpu.matmul %77, %7, %cst_35 {dimension_numbers = #tpu.dot_dimension_numbers<[1], [0], [0], [1], [0, 0, 1, 1], [], []>} : vector<8x128xf32>, vector<128x512xf32>, vector<8x512xf32> -> vector<8x512xf32>
    %80 = arith.addf %78, %79 : vector<8x512xf32>
    %81 = vector.extract_strided_slice %80 {offsets = [0, 0], sizes = [8, 128], strides = [1, 1]} : vector<8x512xf32> to vector<8x128xf32>
    %cst_36 = arith.constant 5.000000e-01 : f32
    %82 = vector.broadcast %cst_36 : f32 to vector<8x128xf32>
    %83 = arith.mulf %82, %81 : vector<8x128xf32>
    %84 = math.tanh %83 : vector<8x128xf32>
    %cst_37 = arith.constant 5.000000e-01 : f32
    %85 = vector.broadcast %cst_37 : f32 to vector<8x128xf32>
    %86 = arith.mulf %85, %84 : vector<8x128xf32>
    %cst_38 = arith.constant 5.000000e-01 : f32
    %87 = vector.broadcast %cst_38 : f32 to vector<8x128xf32>
    %88 = arith.addf %86, %87 : vector<8x128xf32>
    %89 = vector.extract_strided_slice %80 {offsets = [0, 128], sizes = [8, 128], strides = [1, 1]} : vector<8x512xf32> to vector<8x128xf32>
    %cst_39 = arith.constant 5.000000e-01 : f32
    %90 = vector.broadcast %cst_39 : f32 to vector<8x128xf32>
    %91 = arith.mulf %90, %89 : vector<8x128xf32>
    %92 = math.tanh %91 : vector<8x128xf32>
    %cst_40 = arith.constant 5.000000e-01 : f32
    %93 = vector.broadcast %cst_40 : f32 to vector<8x128xf32>
    %94 = arith.mulf %93, %92 : vector<8x128xf32>
    %cst_41 = arith.constant 5.000000e-01 : f32
    %95 = vector.broadcast %cst_41 : f32 to vector<8x128xf32>
    %96 = arith.addf %94, %95 : vector<8x128xf32>
    %97 = vector.extract_strided_slice %80 {offsets = [0, 256], sizes = [8, 128], strides = [1, 1]} : vector<8x512xf32> to vector<8x128xf32>
    %98 = math.tanh %97 : vector<8x128xf32>
    %99 = vector.extract_strided_slice %80 {offsets = [0, 384], sizes = [8, 128], strides = [1, 1]} : vector<8x512xf32> to vector<8x128xf32>
    %cst_42 = arith.constant 5.000000e-01 : f32
    %100 = vector.broadcast %cst_42 : f32 to vector<8x128xf32>
    %101 = arith.mulf %100, %99 : vector<8x128xf32>
    %102 = math.tanh %101 : vector<8x128xf32>
    %cst_43 = arith.constant 5.000000e-01 : f32
    %103 = vector.broadcast %cst_43 : f32 to vector<8x128xf32>
    %104 = arith.mulf %103, %102 : vector<8x128xf32>
    %cst_44 = arith.constant 5.000000e-01 : f32
    %105 = vector.broadcast %cst_44 : f32 to vector<8x128xf32>
    %106 = arith.addf %104, %105 : vector<8x128xf32>
    %107 = arith.mulf %96, %75 : vector<8x128xf32>
    %108 = arith.mulf %88, %98 : vector<8x128xf32>
    %109 = arith.addf %107, %108 : vector<8x128xf32>
    %110 = math.tanh %109 : vector<8x128xf32>
    %111 = arith.mulf %106, %110 : vector<8x128xf32>
    %c24 = arith.constant 24 : index
    %c0_45 = arith.constant 0 : index
    %112 = vector.load %arg7[%c24, %c0_45] : memref<64x512xf32, #tpu.memory_space<vmem>>, vector<8x512xf32>
    %cst_46 = arith.constant dense<0.000000e+00> : vector<8x512xf32>
    %113 = tpu.matmul %111, %7, %cst_46 {dimension_numbers = #tpu.dot_dimension_numbers<[1], [0], [0], [1], [0, 0, 1, 1], [], []>} : vector<8x128xf32>, vector<128x512xf32>, vector<8x512xf32> -> vector<8x512xf32>
    %114 = arith.addf %112, %113 : vector<8x512xf32>
    %115 = vector.extract_strided_slice %114 {offsets = [0, 0], sizes = [8, 128], strides = [1, 1]} : vector<8x512xf32> to vector<8x128xf32>
    %cst_47 = arith.constant 5.000000e-01 : f32
    %116 = vector.broadcast %cst_47 : f32 to vector<8x128xf32>
    %117 = arith.mulf %116, %115 : vector<8x128xf32>
    %118 = math.tanh %117 : vector<8x128xf32>
    %cst_48 = arith.constant 5.000000e-01 : f32
    %119 = vector.broadcast %cst_48 : f32 to vector<8x128xf32>
    %120 = arith.mulf %119, %118 : vector<8x128xf32>
    %cst_49 = arith.constant 5.000000e-01 : f32
    %121 = vector.broadcast %cst_49 : f32 to vector<8x128xf32>
    %122 = arith.addf %120, %121 : vector<8x128xf32>
    %123 = vector.extract_strided_slice %114 {offsets = [0, 128], sizes = [8, 128], strides = [1, 1]} : vector<8x512xf32> to vector<8x128xf32>
    %cst_50 = arith.constant 5.000000e-01 : f32
    %124 = vector.broadcast %cst_50 : f32 to vector<8x128xf32>
    %125 = arith.mulf %124, %123 : vector<8x128xf32>
    %126 = math.tanh %125 : vector<8x128xf32>
    %cst_51 = arith.constant 5.000000e-01 : f32
    %127 = vector.broadcast %cst_51 : f32 to vector<8x128xf32>
    %128 = arith.mulf %127, %126 : vector<8x128xf32>
    %cst_52 = arith.constant 5.000000e-01 : f32
    %129 = vector.broadcast %cst_52 : f32 to vector<8x128xf32>
    %130 = arith.addf %128, %129 : vector<8x128xf32>
    %131 = vector.extract_strided_slice %114 {offsets = [0, 256], sizes = [8, 128], strides = [1, 1]} : vector<8x512xf32> to vector<8x128xf32>
    %132 = math.tanh %131 : vector<8x128xf32>
    %133 = vector.extract_strided_slice %114 {offsets = [0, 384], sizes = [8, 128], strides = [1, 1]} : vector<8x512xf32> to vector<8x128xf32>
    %cst_53 = arith.constant 5.000000e-01 : f32
    %134 = vector.broadcast %cst_53 : f32 to vector<8x128xf32>
    %135 = arith.mulf %134, %133 : vector<8x128xf32>
    %136 = math.tanh %135 : vector<8x128xf32>
    %cst_54 = arith.constant 5.000000e-01 : f32
    %137 = vector.broadcast %cst_54 : f32 to vector<8x128xf32>
    %138 = arith.mulf %137, %136 : vector<8x128xf32>
    %cst_55 = arith.constant 5.000000e-01 : f32
    %139 = vector.broadcast %cst_55 : f32 to vector<8x128xf32>
    %140 = arith.addf %138, %139 : vector<8x128xf32>
    %141 = arith.mulf %130, %109 : vector<8x128xf32>
    %142 = arith.mulf %122, %132 : vector<8x128xf32>
    %143 = arith.addf %141, %142 : vector<8x128xf32>
    %144 = math.tanh %143 : vector<8x128xf32>
    %145 = arith.mulf %140, %144 : vector<8x128xf32>
    %c32 = arith.constant 32 : index
    %c0_56 = arith.constant 0 : index
    %146 = vector.load %arg7[%c32, %c0_56] : memref<64x512xf32, #tpu.memory_space<vmem>>, vector<8x512xf32>
    %cst_57 = arith.constant dense<0.000000e+00> : vector<8x512xf32>
    %147 = tpu.matmul %145, %7, %cst_57 {dimension_numbers = #tpu.dot_dimension_numbers<[1], [0], [0], [1], [0, 0, 1, 1], [], []>} : vector<8x128xf32>, vector<128x512xf32>, vector<8x512xf32> -> vector<8x512xf32>
    %148 = arith.addf %146, %147 : vector<8x512xf32>
    %149 = vector.extract_strided_slice %148 {offsets = [0, 0], sizes = [8, 128], strides = [1, 1]} : vector<8x512xf32> to vector<8x128xf32>
    %cst_58 = arith.constant 5.000000e-01 : f32
    %150 = vector.broadcast %cst_58 : f32 to vector<8x128xf32>
    %151 = arith.mulf %150, %149 : vector<8x128xf32>
    %152 = math.tanh %151 : vector<8x128xf32>
    %cst_59 = arith.constant 5.000000e-01 : f32
    %153 = vector.broadcast %cst_59 : f32 to vector<8x128xf32>
    %154 = arith.mulf %153, %152 : vector<8x128xf32>
    %cst_60 = arith.constant 5.000000e-01 : f32
    %155 = vector.broadcast %cst_60 : f32 to vector<8x128xf32>
    %156 = arith.addf %154, %155 : vector<8x128xf32>
    %157 = vector.extract_strided_slice %148 {offsets = [0, 128], sizes = [8, 128], strides = [1, 1]} : vector<8x512xf32> to vector<8x128xf32>
    %cst_61 = arith.constant 5.000000e-01 : f32
    %158 = vector.broadcast %cst_61 : f32 to vector<8x128xf32>
    %159 = arith.mulf %158, %157 : vector<8x128xf32>
    %160 = math.tanh %159 : vector<8x128xf32>
    %cst_62 = arith.constant 5.000000e-01 : f32
    %161 = vector.broadcast %cst_62 : f32 to vector<8x128xf32>
    %162 = arith.mulf %161, %160 : vector<8x128xf32>
    %cst_63 = arith.constant 5.000000e-01 : f32
    %163 = vector.broadcast %cst_63 : f32 to vector<8x128xf32>
    %164 = arith.addf %162, %163 : vector<8x128xf32>
    %165 = vector.extract_strided_slice %148 {offsets = [0, 256], sizes = [8, 128], strides = [1, 1]} : vector<8x512xf32> to vector<8x128xf32>
    %166 = math.tanh %165 : vector<8x128xf32>
    %167 = vector.extract_strided_slice %148 {offsets = [0, 384], sizes = [8, 128], strides = [1, 1]} : vector<8x512xf32> to vector<8x128xf32>
    %cst_64 = arith.constant 5.000000e-01 : f32
    %168 = vector.broadcast %cst_64 : f32 to vector<8x128xf32>
    %169 = arith.mulf %168, %167 : vector<8x128xf32>
    %170 = math.tanh %169 : vector<8x128xf32>
    %cst_65 = arith.constant 5.000000e-01 : f32
    %171 = vector.broadcast %cst_65 : f32 to vector<8x128xf32>
    %172 = arith.mulf %171, %170 : vector<8x128xf32>
    %cst_66 = arith.constant 5.000000e-01 : f32
    %173 = vector.broadcast %cst_66 : f32 to vector<8x128xf32>
    %174 = arith.addf %172, %173 : vector<8x128xf32>
    %175 = arith.mulf %164, %143 : vector<8x128xf32>
    %176 = arith.mulf %156, %166 : vector<8x128xf32>
    %177 = arith.addf %175, %176 : vector<8x128xf32>
    %178 = math.tanh %177 : vector<8x128xf32>
    %179 = arith.mulf %174, %178 : vector<8x128xf32>
    %c40 = arith.constant 40 : index
    %c0_67 = arith.constant 0 : index
    %180 = vector.load %arg7[%c40, %c0_67] : memref<64x512xf32, #tpu.memory_space<vmem>>, vector<8x512xf32>
    %cst_68 = arith.constant dense<0.000000e+00> : vector<8x512xf32>
    %181 = tpu.matmul %179, %7, %cst_68 {dimension_numbers = #tpu.dot_dimension_numbers<[1], [0], [0], [1], [0, 0, 1, 1], [], []>} : vector<8x128xf32>, vector<128x512xf32>, vector<8x512xf32> -> vector<8x512xf32>
    %182 = arith.addf %180, %181 : vector<8x512xf32>
    %183 = vector.extract_strided_slice %182 {offsets = [0, 0], sizes = [8, 128], strides = [1, 1]} : vector<8x512xf32> to vector<8x128xf32>
    %cst_69 = arith.constant 5.000000e-01 : f32
    %184 = vector.broadcast %cst_69 : f32 to vector<8x128xf32>
    %185 = arith.mulf %184, %183 : vector<8x128xf32>
    %186 = math.tanh %185 : vector<8x128xf32>
    %cst_70 = arith.constant 5.000000e-01 : f32
    %187 = vector.broadcast %cst_70 : f32 to vector<8x128xf32>
    %188 = arith.mulf %187, %186 : vector<8x128xf32>
    %cst_71 = arith.constant 5.000000e-01 : f32
    %189 = vector.broadcast %cst_71 : f32 to vector<8x128xf32>
    %190 = arith.addf %188, %189 : vector<8x128xf32>
    %191 = vector.extract_strided_slice %182 {offsets = [0, 128], sizes = [8, 128], strides = [1, 1]} : vector<8x512xf32> to vector<8x128xf32>
    %cst_72 = arith.constant 5.000000e-01 : f32
    %192 = vector.broadcast %cst_72 : f32 to vector<8x128xf32>
    %193 = arith.mulf %192, %191 : vector<8x128xf32>
    %194 = math.tanh %193 : vector<8x128xf32>
    %cst_73 = arith.constant 5.000000e-01 : f32
    %195 = vector.broadcast %cst_73 : f32 to vector<8x128xf32>
    %196 = arith.mulf %195, %194 : vector<8x128xf32>
    %cst_74 = arith.constant 5.000000e-01 : f32
    %197 = vector.broadcast %cst_74 : f32 to vector<8x128xf32>
    %198 = arith.addf %196, %197 : vector<8x128xf32>
    %199 = vector.extract_strided_slice %182 {offsets = [0, 256], sizes = [8, 128], strides = [1, 1]} : vector<8x512xf32> to vector<8x128xf32>
    %200 = math.tanh %199 : vector<8x128xf32>
    %201 = vector.extract_strided_slice %182 {offsets = [0, 384], sizes = [8, 128], strides = [1, 1]} : vector<8x512xf32> to vector<8x128xf32>
    %cst_75 = arith.constant 5.000000e-01 : f32
    %202 = vector.broadcast %cst_75 : f32 to vector<8x128xf32>
    %203 = arith.mulf %202, %201 : vector<8x128xf32>
    %204 = math.tanh %203 : vector<8x128xf32>
    %cst_76 = arith.constant 5.000000e-01 : f32
    %205 = vector.broadcast %cst_76 : f32 to vector<8x128xf32>
    %206 = arith.mulf %205, %204 : vector<8x128xf32>
    %cst_77 = arith.constant 5.000000e-01 : f32
    %207 = vector.broadcast %cst_77 : f32 to vector<8x128xf32>
    %208 = arith.addf %206, %207 : vector<8x128xf32>
    %209 = arith.mulf %198, %177 : vector<8x128xf32>
    %210 = arith.mulf %190, %200 : vector<8x128xf32>
    %211 = arith.addf %209, %210 : vector<8x128xf32>
    %212 = math.tanh %211 : vector<8x128xf32>
    %213 = arith.mulf %208, %212 : vector<8x128xf32>
    %c48 = arith.constant 48 : index
    %c0_78 = arith.constant 0 : index
    %214 = vector.load %arg7[%c48, %c0_78] : memref<64x512xf32, #tpu.memory_space<vmem>>, vector<8x512xf32>
    %cst_79 = arith.constant dense<0.000000e+00> : vector<8x512xf32>
    %215 = tpu.matmul %213, %7, %cst_79 {dimension_numbers = #tpu.dot_dimension_numbers<[1], [0], [0], [1], [0, 0, 1, 1], [], []>} : vector<8x128xf32>, vector<128x512xf32>, vector<8x512xf32> -> vector<8x512xf32>
    %216 = arith.addf %214, %215 : vector<8x512xf32>
    %217 = vector.extract_strided_slice %216 {offsets = [0, 0], sizes = [8, 128], strides = [1, 1]} : vector<8x512xf32> to vector<8x128xf32>
    %cst_80 = arith.constant 5.000000e-01 : f32
    %218 = vector.broadcast %cst_80 : f32 to vector<8x128xf32>
    %219 = arith.mulf %218, %217 : vector<8x128xf32>
    %220 = math.tanh %219 : vector<8x128xf32>
    %cst_81 = arith.constant 5.000000e-01 : f32
    %221 = vector.broadcast %cst_81 : f32 to vector<8x128xf32>
    %222 = arith.mulf %221, %220 : vector<8x128xf32>
    %cst_82 = arith.constant 5.000000e-01 : f32
    %223 = vector.broadcast %cst_82 : f32 to vector<8x128xf32>
    %224 = arith.addf %222, %223 : vector<8x128xf32>
    %225 = vector.extract_strided_slice %216 {offsets = [0, 128], sizes = [8, 128], strides = [1, 1]} : vector<8x512xf32> to vector<8x128xf32>
    %cst_83 = arith.constant 5.000000e-01 : f32
    %226 = vector.broadcast %cst_83 : f32 to vector<8x128xf32>
    %227 = arith.mulf %226, %225 : vector<8x128xf32>
    %228 = math.tanh %227 : vector<8x128xf32>
    %cst_84 = arith.constant 5.000000e-01 : f32
    %229 = vector.broadcast %cst_84 : f32 to vector<8x128xf32>
    %230 = arith.mulf %229, %228 : vector<8x128xf32>
    %cst_85 = arith.constant 5.000000e-01 : f32
    %231 = vector.broadcast %cst_85 : f32 to vector<8x128xf32>
    %232 = arith.addf %230, %231 : vector<8x128xf32>
    %233 = vector.extract_strided_slice %216 {offsets = [0, 256], sizes = [8, 128], strides = [1, 1]} : vector<8x512xf32> to vector<8x128xf32>
    %234 = math.tanh %233 : vector<8x128xf32>
    %235 = vector.extract_strided_slice %216 {offsets = [0, 384], sizes = [8, 128], strides = [1, 1]} : vector<8x512xf32> to vector<8x128xf32>
    %cst_86 = arith.constant 5.000000e-01 : f32
    %236 = vector.broadcast %cst_86 : f32 to vector<8x128xf32>
    %237 = arith.mulf %236, %235 : vector<8x128xf32>
    %238 = math.tanh %237 : vector<8x128xf32>
    %cst_87 = arith.constant 5.000000e-01 : f32
    %239 = vector.broadcast %cst_87 : f32 to vector<8x128xf32>
    %240 = arith.mulf %239, %238 : vector<8x128xf32>
    %cst_88 = arith.constant 5.000000e-01 : f32
    %241 = vector.broadcast %cst_88 : f32 to vector<8x128xf32>
    %242 = arith.addf %240, %241 : vector<8x128xf32>
    %243 = arith.mulf %232, %211 : vector<8x128xf32>
    %244 = arith.mulf %224, %234 : vector<8x128xf32>
    %245 = arith.addf %243, %244 : vector<8x128xf32>
    %246 = math.tanh %245 : vector<8x128xf32>
    %247 = arith.mulf %242, %246 : vector<8x128xf32>
    %c56 = arith.constant 56 : index
    %c0_89 = arith.constant 0 : index
    %248 = vector.load %arg7[%c56, %c0_89] : memref<64x512xf32, #tpu.memory_space<vmem>>, vector<8x512xf32>
    %cst_90 = arith.constant dense<0.000000e+00> : vector<8x512xf32>
    %249 = tpu.matmul %247, %7, %cst_90 {dimension_numbers = #tpu.dot_dimension_numbers<[1], [0], [0], [1], [0, 0, 1, 1], [], []>} : vector<8x128xf32>, vector<128x512xf32>, vector<8x512xf32> -> vector<8x512xf32>
    %250 = arith.addf %248, %249 : vector<8x512xf32>
    %251 = vector.extract_strided_slice %250 {offsets = [0, 0], sizes = [8, 128], strides = [1, 1]} : vector<8x512xf32> to vector<8x128xf32>
    %cst_91 = arith.constant 5.000000e-01 : f32
    %252 = vector.broadcast %cst_91 : f32 to vector<8x128xf32>
    %253 = arith.mulf %252, %251 : vector<8x128xf32>
    %254 = math.tanh %253 : vector<8x128xf32>
    %cst_92 = arith.constant 5.000000e-01 : f32
    %255 = vector.broadcast %cst_92 : f32 to vector<8x128xf32>
    %256 = arith.mulf %255, %254 : vector<8x128xf32>
    %cst_93 = arith.constant 5.000000e-01 : f32
    %257 = vector.broadcast %cst_93 : f32 to vector<8x128xf32>
    %258 = arith.addf %256, %257 : vector<8x128xf32>
    %259 = vector.extract_strided_slice %250 {offsets = [0, 128], sizes = [8, 128], strides = [1, 1]} : vector<8x512xf32> to vector<8x128xf32>
    %cst_94 = arith.constant 5.000000e-01 : f32
    %260 = vector.broadcast %cst_94 : f32 to vector<8x128xf32>
    %261 = arith.mulf %260, %259 : vector<8x128xf32>
    %262 = math.tanh %261 : vector<8x128xf32>
    %cst_95 = arith.constant 5.000000e-01 : f32
    %263 = vector.broadcast %cst_95 : f32 to vector<8x128xf32>
    %264 = arith.mulf %263, %262 : vector<8x128xf32>
    %cst_96 = arith.constant 5.000000e-01 : f32
    %265 = vector.broadcast %cst_96 : f32 to vector<8x128xf32>
    %266 = arith.addf %264, %265 : vector<8x128xf32>
    %267 = vector.extract_strided_slice %250 {offsets = [0, 256], sizes = [8, 128], strides = [1, 1]} : vector<8x512xf32> to vector<8x128xf32>
    %268 = math.tanh %267 : vector<8x128xf32>
    %269 = vector.extract_strided_slice %250 {offsets = [0, 384], sizes = [8, 128], strides = [1, 1]} : vector<8x512xf32> to vector<8x128xf32>
    %cst_97 = arith.constant 5.000000e-01 : f32
    %270 = vector.broadcast %cst_97 : f32 to vector<8x128xf32>
    %271 = arith.mulf %270, %269 : vector<8x128xf32>
    %272 = math.tanh %271 : vector<8x128xf32>
    %cst_98 = arith.constant 5.000000e-01 : f32
    %273 = vector.broadcast %cst_98 : f32 to vector<8x128xf32>
    %274 = arith.mulf %273, %272 : vector<8x128xf32>
    %cst_99 = arith.constant 5.000000e-01 : f32
    %275 = vector.broadcast %cst_99 : f32 to vector<8x128xf32>
    %276 = arith.addf %274, %275 : vector<8x128xf32>
    %277 = arith.mulf %266, %245 : vector<8x128xf32>
    %278 = arith.mulf %258, %268 : vector<8x128xf32>
    %279 = arith.addf %277, %278 : vector<8x128xf32>
    %280 = math.tanh %279 : vector<8x128xf32>
    %281 = arith.mulf %276, %280 : vector<8x128xf32>
    %c0_100 = arith.constant 0 : index
    %c0_101 = arith.constant 0 : index
    %282 = vector.load %arg4[%c0_100, %c0_101] : memref<128x128xf32, #tpu.memory_space<vmem>>, vector<128x128xf32>
    %cst_102 = arith.constant dense<0.000000e+00> : vector<8x128xf32>
    %283 = tpu.matmul %281, %282, %cst_102 {dimension_numbers = #tpu.dot_dimension_numbers<[1], [0], [0], [1], [0, 0, 1, 1], [], []>} : vector<8x128xf32>, vector<128x128xf32>, vector<8x128xf32> -> vector<8x128xf32>
    %c0_103 = arith.constant 0 : index
    %c0_104 = arith.constant 0 : index
    %284 = vector.load %arg5[%c0_103, %c0_104] : memref<1x128xf32, #tpu.memory_space<vmem>>, vector<1x128xf32>
    %285 = vector.broadcast %284 : vector<1x128xf32> to vector<8x128xf32>
    %286 = arith.addf %283, %285 : vector<8x128xf32>
    %c0_105 = arith.constant 0 : index
    %c0_106 = arith.constant 0 : index
    %287 = vector.load %arg6[%c0_105, %c0_106] : memref<8x128xf32, #tpu.memory_space<vmem>>, vector<8x128xf32>
    tpu.vector_store %arg6[%c0_105, %c0_106], %286 {strides = array<i32>} : memref<8x128xf32, #tpu.memory_space<vmem>>, vector<8x128xf32>,
    return
  }
}

</mosaic_0001>

<bundles_post_ra>
// kernel: model_lstm_forward.1
= control target key start
LH: loop header
LB: loop body
LE: loop exit
PB: predicated region body
PF: predicated region fallthrough
CT: control target
= control target key end

     0   :  { %11 = vsyncpa [#allocation4], 0  ;;  %s1474_s24 = smov [#allocation3]   ;;  %s1475_s26 = smov 512   ;;  %s2554_s0 = inlined_call_operand.vmem [shape: f32[64,13], index: 0, kind: input, shape index: {}]   ;;  %s2555_s1 = inlined_call_operand.vmem [shape: f32[13,512], index: 1, kind: input, shape index: {}]   ;;  %s2556_s2 = inlined_call_operand.hbm [shape: f32[128,512], index: 2, kind: input, shape index: {}]   ;;  %s2557_s3 = inlined_call_operand.vmem [shape: f32[1,512], index: 3, kind: input, shape index: {}]   ;;  %s2558_s4 = inlined_call_operand.vmem [shape: f32[128,128], index: 4, kind: input, shape index: {}]   ;;  %s2559_s5 = inlined_call_operand.vmem [shape: f32[1,128], index: 5, kind: input, shape index: {}]   ;;  %s2560_s6 = inlined_call_operand.vmem [shape: f32[8,128], index: 6, kind: output, shape index: {}]  }
   0x1   :  { %s20_s23 = sshll.u32 %s2556_s2, 4  ;;  %s22_s25 = sshll.u32 %s1474_s24, 4  ;;  %s21_s23 = int_to_ptr.hbm [resolvable:$true] %s20_s23  ;;  %s23_s25 = int_to_ptr.vmem [resolvable:$true] %s22_s25 }
   0x2   :  { %s1476_s27 = smov 32  }
   0x3   :  { %28 = dma.hbm_to_vmem [thread:$0]  %s21_s23, 8192, %s23_s25, [#allocation4], %s1475_s26, %s1475_s26, %s1476_s27  }
   0x4   :  { %1472 = dma.done.wait [#allocation4], 8192  }
   0x5   :  { %1473 = vsyncadd [#allocation4], 4294959104  ;;  %vm90_vm0 = vcmask 1044480   ;;  %v51_v0 = vld [vmem:[%s2555_s1 + $0x20] sm:$0x1f]  ;;  %vm65_vm1 = vcmask 105472  }
   0x6   :  { %v47_v1 = vld [vmem:[%s2555_s1] sm:$0xff]  ;;  %1257 = vmatpush.msk.msra.mxu0 %vm90_vm0, %v51_v0  ;;  %1293 = vmatpush.msk.msra.mxu1 %vm90_vm0, %v51_v0  ;;  %v1532_v3 = vld [vmem:[%s2554_s0 + $0x28] sm:$0xff]  ;;  %v1537_v4 = vld [vmem:[%s2554_s0 + $0x30] sm:$0xff] }
   0x7   :  { %1294 = vmatpush.msk.msra.mxu2 %vm90_vm0, %v51_v0  ;;  %1295 = vmatpush.msk.msra.mxu3 %vm90_vm0, %v51_v0  ;;  %v39_v2 = vld [vmem:[%s2554_s0] sm:$0xff]  ;;  %v1542_v5 = vld [vmem:[%s2554_s0 + $0x38] sm:$0xff]  ;;  %v52_v6 = vld [vmem:[%s2555_s1 + $0x28] sm:$0x1f] }
   0x8   :  { %118 = vmatpush.msra.mxu0 %v47_v1  ;;  %1296 = vmatpush.msra.mxu1 %v47_v1  ;;  %v53_v7 = vld [vmem:[%s2555_s1 + $0x30] sm:$0x1f]  ;;  %v54_v8 = vld [vmem:[%s2555_s1 + $0x38] sm:$0x1f]  ;;  %v1556_v9 = vld [vmem:[#allocation3 + $0x1e0] sm:$0xff] }
   0x9   :  { %1297 = vmatpush.msra.mxu2 %v47_v1  ;;  %1298 = vmatpush.msra.mxu3 %v47_v1  ;;  %v48_v10 = vld [vmem:[%s2555_s1 + $0x8] sm:$0xff]  ;;  %v49_v11 = vld [vmem:[%s2555_s1 + $0x10] sm:$0xff]  ;;  %v50_v12 = vld [vmem:[%s2555_s1 + $0x18] sm:$0xff] }
   0xa   :  { %1258 = vmatmul.msk.f32.vlgmr.msra.gmra.mxu0 %vm65_vm1, %v39_v2  ;;  %1263 = vmatmul.msk.f32.vlgmr.msra.gmra.mxu1 %vm65_vm1, %v1532_v3  ;;  %v1573_v13 = vld [vmem:[#allocation3 + $0x1e8] sm:$0xff]  ;;  %v1576_v14 = vld [vmem:[#allocation3 + $0x1f0] sm:$0xff]  ;;  %v1579_v15 = vld [vmem:[#allocation3 + $0x1c0] sm:$0xff] }
   0xb   :  { %1264 = vmatmul.msk.f32.vlgmr.msra.gmra.mxu2 %vm65_vm1, %v1537_v4  ;;  %1265 = vmatmul.msk.f32.vlgmr.msra.gmra.mxu3 %vm65_vm1, %v1542_v5  ;;  %v1581_v16 = vld [vmem:[#allocation3 + $0x1c8] sm:$0xff]  ;;  %v1583_v17 = vld [vmem:[#allocation3 + $0x1f8] sm:$0xff]  ;;  %v1592_v19 = vld [vmem:[#allocation3 + $0x1d0] sm:$0xff] }
   0xc   :  { %1266 = vmatpush.msk.msrb.mxu1 %vm90_vm0, %v52_v6  ;;  %1275 = vmatpush.msk.msrb.mxu2 %vm90_vm0, %v53_v7  ;;  %v40_v18 = vld [vmem:[%s2554_s0 + $0x8] sm:$0xff]  ;;  %v1594_v20 = vld [vmem:[#allocation3 + $0x1a0] sm:$0xff]  ;;  %v1601_v22 = vld [vmem:[#allocation3 + $0x1d8] sm:$0xff] }
   0xd   :  { %1284 = vmatpush.msk.msrb.mxu3 %vm90_vm0, %v54_v8  ;;  %367 = vmatpush.msrb.mxu0 %v1556_v9  ;;  %v1599_v21 = vld [vmem:[#allocation3 + $0x1a8] sm:$0xff]  ;;  %v1605_v23 = vld [vmem:[#allocation3 + $0x180] sm:$0xff]  ;;  %v1607_v24 = vld [vmem:[#allocation3 + $0x1b0] sm:$0xff] }
   0xe   :  { %159 = vmatpush.msrb.mxu1 %v48_v10  ;;  %200 = vmatpush.msrb.mxu2 %v49_v11  ;;  %v1611_v25 = vld [vmem:[#allocation3 + $0x188] sm:$0xff]  ;;  %v1613_v26 = vld [vmem:[#allocation3 + $0x1b8] sm:$0xff]  ;;  %v1616_v27 = vld [vmem:[#allocation3 + $0x160] sm:$0xff] }
   0xf   :  { %241 = vmatpush.msrb.mxu3 %v50_v12  ;;  %368 = vmatpush.msrb.mxu0 %v1579_v15  ;;  %v1619_v28 = vld [vmem:[#allocation3 + $0x190] sm:$0xff]  ;;  %v1623_v29 = vld [vmem:[#allocation3 + $0x168] sm:$0xff]  ;;  %v1625_v30 = vld [vmem:[#allocation3 + $0x198] sm:$0xff] }
  0x10   :  { %387 = vmatpush.msra.mxu1 %v1573_v13  ;;  %407 = vmatpush.msra.mxu2 %v1576_v14  ;;  %v41_v31 = vld [vmem:[%s2554_s0 + $0x10] sm:$0xff]  ;;  %v1634_v32 = vld [vmem:[#allocation3 + $0x140] sm:$0xff]  ;;  %v1642_v34 = vld [vmem:[#allocation3 + $0x148] sm:$0xff] }
  0x11   :  { %427 = vmatpush.msra.mxu3 %v1583_v17  ;;  %369 = vmatpush.msrb.mxu0 %v1594_v20  ;;  %v1637_v33 = vld [vmem:[#allocation3 + $0x170] sm:$0xff]  ;;  %v1644_v35 = vld [vmem:[#allocation3 + $0x178] sm:$0xff]  ;;  %v1648_v36 = vld [vmem:[#allocation3 + $0x120] sm:$0xff] }
  0x12   :  { %388 = vmatpush.msra.mxu1 %v1581_v16  ;;  %1259 = vmatmul.msk.f32.gmra.mxu0 %vm65_vm1, %v40_v18  ;;  %v1650_v37 = vld [vmem:[#allocation3 + $0x150] sm:$0xff]  ;;  %v1654_v38 = vld [vmem:[#allocation3 + $0x128] sm:$0xff]  ;;  %v1656_v39 = vld [vmem:[#allocation3 + $0x158] sm:$0xff] }
  0x13   :  { %1267 = vmatmul.msk.f32.vlgmr.msrb.gmra.mxu1 %vm65_vm1, %v39_v2  ;;  %1276 = vmatmul.msk.f32.vlgmr.msrb.gmra.mxu2 %vm65_vm1, %v39_v2  ;;  %v1658_v40 = vld [vmem:[#allocation3 + $0x100] sm:$0xff]  ;;  %v1662_v41 = vld [vmem:[#allocation3 + $0x130] sm:$0xff]  ;;  %v1666_v42 = vld [vmem:[#allocation3 + $0x108] sm:$0xff] }
  0x14   :  { %1285 = vmatmul.msk.f32.vlgmr.msrb.gmra.mxu3 %vm65_vm1, %v39_v2  ;;  %408 = vmatpush.msra.mxu2 %v1592_v19  ;;  %v1668_v43 = vld [vmem:[#allocation3 + $0x138] sm:$0xff]  ;;  %v1677_v45 = vld [vmem:[#allocation3 + $0xe0] sm:$0xff]  ;;  %v1680_v46 = vld [vmem:[#allocation3 + $0x110] sm:$0xff] }
  0x15   :  { %389 = vmatpush.msra.mxu1 %v1599_v21  ;;  %428 = vmatpush.msra.mxu3 %v1601_v22  ;;  %v42_v44 = vld [vmem:[%s2554_s0 + $0x18] sm:$0xff]  ;;  %v1685_v47 = vld [vmem:[#allocation3 + $0xe8] sm:$0xff]  ;;  %v1691_v49 = vld [vmem:[#allocation3 + $0xc0] sm:$0xff] }
  0x16   :  { %370 = vmatpush.msrb.mxu0 %v1605_v23  ;;  %409 = vmatpush.msra.mxu2 %v1607_v24  ;;  %v1687_v48 = vld [vmem:[#allocation3 + $0x118] sm:$0xff]  ;;  %v1693_v50 = vld [vmem:[#allocation3 + $0xf0] sm:$0xff]  ;;  %v1697_v51 = vld [vmem:[#allocation3 + $0xc8] sm:$0xff] }
  0x17   :  { %390 = vmatpush.msra.mxu1 %v1611_v25  ;;  %429 = vmatpush.msra.mxu3 %v1613_v26  ;;  %v1699_v52 = vld [vmem:[#allocation3 + $0xf8] sm:$0xff]  ;;  %v1701_v53 = vld [vmem:[#allocation3 + $0xa0] sm:$0xff]  ;;  %v1705_v54 = vld [vmem:[#allocation3 + $0xd0] sm:$0xff] }
  0x18   :  { %371 = vmatpush.msrb.mxu0 %v1616_v27  ;;  %410 = vmatpush.msra.mxu2 %v1619_v28  ;;  %2652 = vst [vmem:[#allocation6_spill] sm:$0xff] %v1701_v53  ;;  %v1709_v55 = vld [vmem:[#allocation3 + $0xa8] sm:$0xff]  ;;  %v1711_v56 = vld [vmem:[#allocation3 + $0xd8] sm:$0xff]  ;;  %v1713_v57 = vld [vmem:[#allocation3 + $0x80] sm:$0xff] }
  0x19   :  { %391 = vmatpush.msra.mxu1 %v1623_v29  ;;  %430 = vmatpush.msra.mxu3 %v1625_v30  ;;  %2653 = vst [vmem:[#allocation7_spill] sm:$0xff] %v1709_v55  ;;  %v43_v58 = vld [vmem:[%s2554_s0 + $0x20] sm:$0xff]  ;;  %v1728_v60 = vld [vmem:[#allocation3 + $0xb0] sm:$0xff]  ;;  %v1730_v61 = vld [vmem:[#allocation3 + $0x88] sm:$0xff] }
  0x1a   :  { %1260 = vmatmul.msk.f32.gmra.mxu0 %vm65_vm1, %v41_v31  ;;  %411 = vmatpush.msra.mxu2 %v1637_v33  ;;  %2654 = vst [vmem:[#allocation8_spill] sm:$0xff] %v1711_v56  ;;  %v1722_v59 = vld [vmem:[#allocation3 + $0x60] sm:$0xff]  ;;  %v1736_v63 = vld [vmem:[#allocation3 + $0xb8] sm:$0xff]  ;;  %v1740_v0 = vld [vmem:[#allocation3 + $0x90] sm:$0xff] }
  0x1b   :  { %1268 = vmatmul.msk.f32.gmra.mxu1 %vm65_vm1, %v40_v18  ;;  %1277 = vmatmul.msk.f32.gmra.mxu2 %vm65_vm1, %v40_v18  ;;  %2655 = vst [vmem:[#allocation9_spill] sm:$0xff] %v1713_v57  ;;  %v1734_v62 = vld [vmem:[#allocation3 + $0x40] sm:$0xff]  ;;  %v1742_v1 = vld [vmem:[#allocation3 + $0x68] sm:$0xff]  ;;  %v1748_v6 = vld [vmem:[#allocation3 + $0x98] sm:$0xff] }
  0x1c   :  { %1286 = vmatmul.msk.f32.gmra.mxu3 %vm65_vm1, %v40_v18  ;;  %372 = vmatpush.msrb.mxu0 %v1634_v32  ;;  %2656 = vst [vmem:[#allocation10_spill] sm:$0xff] %v1722_v59  ;;  %v1744_v2 = vld [vmem:[#allocation3 + $0x20] sm:$0xff]  ;;  %v1752_v7 = vld [vmem:[#allocation3 + $0x70] sm:$0xff]  ;;  %v1754_v8 = vld [vmem:[#allocation3 + $0x48] sm:$0xff] }
  0x1d   :  { %392 = vmatpush.msra.mxu1 %v1642_v34  ;;  %431 = vmatpush.msra.mxu3 %v1644_v35  ;;  %2657 = vst [vmem:[#allocation11_spill] sm:$0xff] %v1728_v60  ;;  %v1756_v10 = vld [vmem:[#allocation3] sm:$0xff]  ;;  %v1764_v11 = vld [vmem:[#allocation3 + $0x50] sm:$0xff]  ;;  %v1768_v12 = vld [vmem:[#allocation3 + $0x78] sm:$0xff] }
  0x1e   :  { %373 = vmatpush.msrb.mxu0 %v1648_v36  ;;  %412 = vmatpush.msra.mxu2 %v1650_v37  ;;  %2658 = vst [vmem:[#allocation12_spill] sm:$0xff] %v1730_v61  ;;  %v1770_v18 = vld [vmem:[#allocation3 + $0x28] sm:$0xff] }
  0x1f   :  { %393 = vmatpush.msra.mxu1 %v1654_v38  ;;  %432 = vmatpush.msra.mxu3 %v1656_v39  ;;  %2659 = vst [vmem:[#allocation13_spill] sm:$0xff] %v1734_v62 }
  0x20   :  { %374 = vmatpush.msrb.mxu0 %v1658_v40  ;;  %413 = vmatpush.msra.mxu2 %v1662_v41  ;;  %2660 = vst [vmem:[#allocation14_spill] sm:$0xff] %v1736_v63 }
  0x21   :  { %394 = vmatpush.msra.mxu1 %v1666_v42  ;;  %433 = vmatpush.msra.mxu3 %v1668_v43  ;;  %2661 = vst [vmem:[#allocation15_spill] sm:$0xff] %v1740_v0 }
  0x22   :  { %1261 = vmatmul.msk.f32.gmra.mxu0 %vm65_vm1, %v42_v44  ;;  %414 = vmatpush.msra.mxu2 %v1680_v46  ;;  %2662 = vst [vmem:[#allocation16_spill] sm:$0xff] %v1742_v1 }
  0x23   :  { %1269 = vmatmul.msk.f32.gmra.mxu1 %vm65_vm1, %v41_v31  ;;  %1278 = vmatmul.msk.f32.gmra.mxu2 %vm65_vm1, %v41_v31  ;;  %2663 = vst [vmem:[#allocation17_spill] sm:$0xff] %v1744_v2 }
  0x24   :  { %1287 = vmatmul.msk.f32.gmra.mxu3 %vm65_vm1, %v41_v31  ;;  %375 = vmatpush.msrb.mxu0 %v1677_v45  ;;  %2664 = vst [vmem:[#allocation18_spill] sm:$0xff] %v1748_v6  ;;  %v1477_v31 = vmov 0.0  }
  0x25   :  { %395 = vmatpush.msra.mxu1 %v1685_v47  ;;  %434 = vmatpush.msra.mxu3 %v1687_v48  ;;  %2665 = vst [vmem:[#allocation19_spill] sm:$0xff] %v1752_v7 }
  0x26   :  { %376 = vmatpush.msrb.mxu0 %v1691_v49  ;;  %415 = vmatpush.msra.mxu2 %v1693_v50  ;;  %2666 = vst [vmem:[#allocation20_spill] sm:$0xff] %v1754_v8 }
  0x27   :  { %396 = vmatpush.msra.mxu1 %v1697_v51  ;;  %435 = vmatpush.msra.mxu3 %v1699_v52  ;;  %2667 = vst [vmem:[#allocation21_spill] sm:$0xff] %v1756_v10 }
  0x28   :  { %377 = vmatpush.msrb.mxu0 %v1701_v53  ;;  %416 = vmatpush.msra.mxu2 %v1705_v54  ;;  %2668 = vst [vmem:[#allocation22_spill] sm:$0xff] %v1764_v11 }
  0x29   :  { %397 = vmatpush.msra.mxu1 %v1709_v55  ;;  %436 = vmatpush.msra.mxu3 %v1711_v56  ;;  %2669 = vst [vmem:[#allocation23_spill] sm:$0xff] %v1768_v12 }
  0x2a   :  { %378 = vmatpush.msrb.mxu0 %v1713_v57  ;;  %417 = vmatpush.msra.mxu2 %v1728_v60  ;;  %2670 = vst [vmem:[#allocation24_spill] sm:$0xff] %v1770_v18 }
  0x2b   :  { %1270 = vmatmul.msk.f32.gmra.mxu1 %vm65_vm1, %v42_v44  ;;  %1262 = vmatmul.msk.f32.gmra.mxu0 %vm65_vm1, %v43_v58 }
  0x2c   :  { %1279 = vmatmul.msk.f32.gmra.mxu2 %vm65_vm1, %v42_v44  ;;  %1288 = vmatmul.msk.f32.gmra.mxu3 %vm65_vm1, %v42_v44  ;;  %v1774_v44 = vld [vmem:[#allocation3 + $0x30] sm:$0xff] }
  0x2d   :  { %379 = vmatpush.msrb.mxu0 %v1722_v59  ;;  %398 = vmatpush.msra.mxu1 %v1730_v61  ;;  %2671 = vst [vmem:[#allocation25_spill] sm:$0xff] %v1774_v44 }
  0x2e   :  { %437 = vmatpush.msra.mxu3 %v1736_v63  ;;  %418 = vmatpush.msra.mxu2 %v1740_v0 }
  0x2f   :  { %380 = vmatpush.msrb.mxu0 %v1734_v62  ;;  %399 = vmatpush.msra.mxu1 %v1742_v1  ;;  %v1787_v62 = vld [vmem:[#allocation3 + $0x38] sm:$0xff] }
  0x30   :  { %438 = vmatpush.msra.mxu3 %v1748_v6  ;;  %419 = vmatpush.msra.mxu2 %v1752_v7  ;;  %2675 = vst [vmem:[#allocation29_spill] sm:$0xff] %v1787_v62 }
  0x31   :  { %381 = vmatpush.msrb.mxu0 %v1744_v2  ;;  %400 = vmatpush.msra.mxu1 %v1754_v8  ;;  %v1778_v2 = vld [vmem:[#allocation3 + $0x58] sm:$0xff]  ;;  %v1784_v8 = vld [vmem:[#allocation3 + $0x10] sm:$0xff] }
  0x32   :  { %420 = vmatpush.msra.mxu2 %v1764_v11  ;;  %2672 = vst [vmem:[#allocation26_spill] sm:$0xff] %v1778_v2  ;;  %439 = vmatpush.msra.mxu3 %v1768_v12 }
  0x33   :  { %382 = vmatpush.msrb.mxu0 %v1756_v10  ;;  %1271 = vmatmul.msk.f32.gmra.mxu1 %vm65_vm1, %v43_v58  ;;  %v1780_v10 = vld [vmem:[#allocation3 + $0x8] sm:$0xff]  ;;  %2674 = vst [vmem:[#allocation28_spill] sm:$0xff] %v1784_v8 }
  0x34   :  { %1280 = vmatmul.msk.f32.gmra.mxu2 %vm65_vm1, %v43_v58  ;;  %383 = vmatmul.f32.vlgmr.msrb.gmra.mxu0 %v1477_v31  ;;  %2673 = vst [vmem:[#allocation27_spill] sm:$0xff] %v1780_v10 }
  0x35   :  { %1289 = vmatmul.msk.f32.gmra.mxu3 %vm65_vm1, %v43_v58  ;;  %401 = vmatpush.msra.mxu1 %v1770_v18  ;;  %v1793_v58 = vld [vmem:[#allocation3 + $0x18] sm:$0xff] }
  0x36   :  { %421 = vmatpush.msra.mxu2 %v1774_v44  ;;  %473 = vmatpush.msra.mxu0 %v1556_v9  ;;  %2676 = vst [vmem:[#allocation30_spill] sm:$0xff] %v1793_v58 }
  0x37   :  { %440 = vmatpush.msra.mxu3 %v1778_v2  ;;  %402 = vmatpush.msra.mxu1 %v1780_v10 }
  0x38   :  { %422 = vmatpush.msra.mxu2 %v1784_v8  ;;  %474 = vmatpush.msra.mxu0 %v1579_v15 }
  0x39   :  { %493 = vmatpush.msrb.mxu1 %v1573_v13  ;;  %441 = vmatpush.msra.mxu3 %v1787_v62 }
  0x3a   :  { %513 = vmatpush.msrb.mxu2 %v1576_v14  ;;  %475 = vmatpush.msra.mxu0 %v1594_v20 }
  0x3b   :  { %1272 = vmatmul.msk.f32.gmra.mxu1 %vm65_vm1, %v1532_v3  ;;  %442 = vmatpush.msra.mxu3 %v1793_v58 }
  0x3c   :  { %1281 = vmatmul.msk.f32.gmra.mxu2 %vm65_vm1, %v1532_v3  ;;  %494 = vmatpush.msrb.mxu1 %v1581_v16 }
  0x3d   :  { %1290 = vmatmul.msk.f32.gmra.mxu3 %vm65_vm1, %v1532_v3  ;;  %514 = vmatpush.msrb.mxu2 %v1592_v19  ;;  %v2677_v3 = vld [vmem:[#allocation13_spill] sm:$0xff] }
  0x3e   :  { %533 = vmatpush.msrb.mxu3 %v1583_v17  ;;  %495 = vmatpush.msrb.mxu1 %v1599_v21 }
  0x3f   :  { %515 = vmatpush.msrb.mxu2 %v1607_v24  ;;  %476 = vmatpush.msra.mxu0 %v1605_v23 }
  0x40   :  { %534 = vmatpush.msrb.mxu3 %v1601_v22  ;;  %496 = vmatpush.msrb.mxu1 %v1611_v25 }
  0x41   :  { %516 = vmatpush.msrb.mxu2 %v1619_v28  ;;  %477 = vmatpush.msra.mxu0 %v1616_v27 }
  0x42   :  { %535 = vmatpush.msrb.mxu3 %v1613_v26  ;;  %497 = vmatpush.msrb.mxu1 %v1623_v29 }
  0x43   :  { %1273 = vmatmul.msk.f32.gmra.mxu1 %vm65_vm1, %v1537_v4  ;;  %517 = vmatpush.msrb.mxu2 %v1637_v33 }
  0x44   :  { %1282 = vmatmul.msk.f32.gmra.mxu2 %vm65_vm1, %v1537_v4  ;;  %536 = vmatpush.msrb.mxu3 %v1625_v30 }
  0x45   :  { %1291 = vmatmul.msk.f32.gmra.mxu3 %vm65_vm1, %v1537_v4  ;;  %478 = vmatpush.msra.mxu0 %v1634_v32  ;;  %v2678_v4 = vld [vmem:[#allocation20_spill] sm:$0xff] }
  0x46   :  { %537 = vmatpush.msrb.mxu3 %v1644_v35  ;;  %498 = vmatpush.msrb.mxu1 %v1642_v34 }
  0x47   :  { %518 = vmatpush.msrb.mxu2 %v1650_v37  ;;  %479 = vmatpush.msra.mxu0 %v1648_v36 }
  0x48   :  { %538 = vmatpush.msrb.mxu3 %v1656_v39  ;;  %499 = vmatpush.msrb.mxu1 %v1654_v38 }
  0x49   :  { %519 = vmatpush.msrb.mxu2 %v1662_v41  ;;  %480 = vmatpush.msra.mxu0 %v1658_v40 }
  0x4a   :  { %539 = vmatpush.msrb.mxu3 %v1668_v43  ;;  %500 = vmatpush.msrb.mxu1 %v1666_v42 }
  0x4b   :  { %1274 = vmatmul.msk.f32.gmra.mxu1 %vm65_vm1, %v1542_v5  ;;  %520 = vmatpush.msrb.mxu2 %v1680_v46 }
  0x4c   :  { %1283 = vmatmul.msk.f32.gmra.mxu2 %vm65_vm1, %v1542_v5  ;;  %540 = vmatpush.msrb.mxu3 %v1687_v48 }
  0x4d   :  { %1292 = vmatmul.msk.f32.gmra.mxu3 %vm65_vm1, %v1542_v5  ;;  %481 = vmatpush.msra.mxu0 %v1677_v45  ;;  %v2679_v5 = vld [vmem:[#allocation17_spill] sm:$0xff] }
  0x4e   :  { %501 = vmatpush.msrb.mxu1 %v1685_v47  ;;  %521 = vmatpush.msrb.mxu2 %v1693_v50 }
  0x4f   :  { %541 = vmatpush.msrb.mxu3 %v1699_v52  ;;  %482 = vmatpush.msra.mxu0 %v1691_v49 }
  0x50   :  { %502 = vmatpush.msrb.mxu1 %v1697_v51  ;;  %522 = vmatpush.msrb.mxu2 %v1705_v54 }
  0x51   :  { %542 = vmatpush.msrb.mxu3 %v1711_v56  ;;  %483 = vmatpush.msra.mxu0 %v1701_v53 }
  0x52   :  { %523 = vmatpush.msrb.mxu2 %v1728_v60  ;;  %503 = vmatpush.msrb.mxu1 %v1709_v55 }
  0x53   :  { %403 = vmatmul.f32.vlgmr.msra.gmra.mxu1 %v1477_v31  ;;  %484 = vmatpush.msra.mxu0 %v1713_v57 }
  0x54   :  { %423 = vmatmul.f32.vlgmr.msra.gmra.mxu2 %v1477_v31  ;;  %543 = vmatpush.msrb.mxu3 %v1736_v63 }
  0x55   :  { %443 = vmatmul.f32.vlgmr.msra.gmra.mxu3 %v1477_v31  ;;  %504 = vmatpush.msrb.mxu1 %v1730_v61  ;;  %v2680_v31 = vld [vmem:[#allocation21_spill] sm:$0xff] }
  0x56   :  { %524 = vmatpush.msrb.mxu2 %v1740_v0  ;;  %485 = vmatpush.msra.mxu0 %v1722_v59 }
  0x57   :  { %544 = vmatpush.msrb.mxu3 %v1748_v6  ;;  %505 = vmatpush.msrb.mxu1 %v1742_v1 }
  0x58   :  { %525 = vmatpush.msrb.mxu2 %v1752_v7  ;;  %486 = vmatpush.msra.mxu0 %v2677_v3 }
  0x59   :  { %545 = vmatpush.msrb.mxu3 %v1768_v12  ;;  %506 = vmatpush.msrb.mxu1 %v2678_v4 }
  0x5a   :  { %526 = vmatpush.msrb.mxu2 %v1764_v11  ;;  %487 = vmatpush.msra.mxu0 %v2679_v5 }
  0x5b   :  { %546 = vmatpush.msrb.mxu3 %v1778_v2  ;;  %507 = vmatpush.msrb.mxu1 %v1770_v18 }
  0x5c   :  { %527 = vmatpush.msrb.mxu2 %v1774_v44  ;;  %488 = vmatpush.msra.mxu0 %v2680_v31 }
  0x5d   :  { %547 = vmatpush.msrb.mxu3 %v1787_v62  ;;  %508 = vmatpush.msrb.mxu1 %v1780_v10 }
  0x5e   :  { %528 = vmatpush.msrb.mxu2 %v1784_v8  ;;  %579 = vmatpush.msrb.mxu0 %v1556_v9 }
  0x5f   :  { %548 = vmatpush.msrb.mxu3 %v1793_v58  ;;  %599 = vmatpush.msra.mxu1 %v1573_v13 }
  0x60   :  { %619 = vmatpush.msra.mxu2 %v1576_v14  ;;  %580 = vmatpush.msrb.mxu0 %v1579_v15 }
  0x61   :  { %639 = vmatpush.msra.mxu3 %v1583_v17  ;;  %600 = vmatpush.msra.mxu1 %v1581_v16 }
  0x62   :  { %620 = vmatpush.msra.mxu2 %v1592_v19  ;;  %581 = vmatpush.msrb.mxu0 %v1594_v20 }
  0x63   :  { %640 = vmatpush.msra.mxu3 %v1601_v22  ;;  %601 = vmatpush.msra.mxu1 %v1599_v21 }
  0x64   :  { %621 = vmatpush.msra.mxu2 %v1607_v24  ;;  %582 = vmatpush.msrb.mxu0 %v1605_v23 }
  0x65   :  { %641 = vmatpush.msra.mxu3 %v1613_v26  ;;  %602 = vmatpush.msra.mxu1 %v1611_v25 }
  0x66   :  { %622 = vmatpush.msra.mxu2 %v1619_v28  ;;  %583 = vmatpush.msrb.mxu0 %v1616_v27 }
  0x67   :  { %642 = vmatpush.msra.mxu3 %v1625_v30  ;;  %603 = vmatpush.msra.mxu1 %v1623_v29 }
  0x68   :  { %623 = vmatpush.msra.mxu2 %v1637_v33  ;;  %584 = vmatpush.msrb.mxu0 %v1634_v32 }
  0x69   :  { %643 = vmatpush.msra.mxu3 %v1644_v35  ;;  %604 = vmatpush.msra.mxu1 %v1642_v34 }
  0x6a   :  { %624 = vmatpush.msra.mxu2 %v1650_v37  ;;  %585 = vmatpush.msrb.mxu0 %v1648_v36 }
  0x6b   :  { %644 = vmatpush.msra.mxu3 %v1656_v39  ;;  %605 = vmatpush.msra.mxu1 %v1654_v38 }
  0x6c   :  { %625 = vmatpush.msra.mxu2 %v1662_v41  ;;  %586 = vmatpush.msrb.mxu0 %v1658_v40 }
  0x6d   :  { %645 = vmatpush.msra.mxu3 %v1668_v43  ;;  %606 = vmatpush.msra.mxu1 %v1666_v42 }
  0x6e   :  { %626 = vmatpush.msra.mxu2 %v1680_v46  ;;  %587 = vmatpush.msrb.mxu0 %v1677_v45 }
  0x6f   :  { %646 = vmatpush.msra.mxu3 %v1687_v48  ;;  %607 = vmatpush.msra.mxu1 %v1685_v47 }
  0x70   :  { %627 = vmatpush.msra.mxu2 %v1693_v50  ;;  %588 = vmatpush.msrb.mxu0 %v1691_v49 }
  0x71   :  { %647 = vmatpush.msra.mxu3 %v1699_v52  ;;  %608 = vmatpush.msra.mxu1 %v1697_v51 }
  0x72   :  { %628 = vmatpush.msra.mxu2 %v1705_v54  ;;  %589 = vmatpush.msrb.mxu0 %v1701_v53 }
  0x73   :  { %648 = vmatpush.msra.mxu3 %v1711_v56  ;;  %609 = vmatpush.msra.mxu1 %v1709_v55 }
  0x74   :  { %629 = vmatpush.msra.mxu2 %v1728_v60  ;;  %590 = vmatpush.msrb.mxu0 %v1713_v57 }
  0x75   :  { %649 = vmatpush.msra.mxu3 %v1736_v63  ;;  %610 = vmatpush.msra.mxu1 %v1730_v61 }
  0x76   :  { %630 = vmatpush.msra.mxu2 %v1740_v0  ;;  %591 = vmatpush.msrb.mxu0 %v1722_v59 }
  0x77   :  { %650 = vmatpush.msra.mxu3 %v1748_v6  ;;  %611 = vmatpush.msra.mxu1 %v1742_v1 }
  0x78   :  { %631 = vmatpush.msra.mxu2 %v1752_v7  ;;  %592 = vmatpush.msrb.mxu0 %v2677_v3 }
  0x79   :  { %651 = vmatpush.msra.mxu3 %v1768_v12  ;;  %612 = vmatpush.msra.mxu1 %v2678_v4 }
  0x7a   :  { %632 = vmatpush.msra.mxu2 %v1764_v11  ;;  %593 = vmatpush.msrb.mxu0 %v2679_v5 }
  0x7b   :  { %652 = vmatpush.msra.mxu3 %v1778_v2  ;;  %613 = vmatpush.msra.mxu1 %v1770_v18  ;;  %v55_v2 = vld [vmem:[%s2557_s3] sm:$0xf] }
  0x7c   :  { %633 = vmatpush.msra.mxu2 %v1774_v44  ;;  %594 = vmatpush.msrb.mxu0 %v2680_v31  ;;  %v57_v11 = vperm.slane %v55_v2, 0 }
  0x7d   :  { %653 = vmatpush.msra.mxu3 %v1787_v62  ;;  %614 = vmatpush.msra.mxu1 %v1780_v10 }
  0x7e   :  { %634 = vmatpush.msra.mxu2 %v1784_v8 }
  0x7f   :  { %654 = vmatpush.msra.mxu3 %v1793_v58  ;;  %v58_v58 = vperm.slane %v55_v2, 1 }
  0x87   :  { %v120_v5 = vpop.f32.mrf.mxu0  ;;  %v135_v4 = vpop.f32.mrf.mxu1 }
  0x88   :  { %v1948_v18 = vadd.f32 %v135_v4, %v57_v11  ;;  %v59_v4 = vperm.slane %v55_v2, 2 }
  0x8a   :  { %2681 = vst [vmem:[#allocation31_spill] sm:$0xff] %v1948_v18  ;;  %v60_v18 = vperm.slane %v55_v2, 3 }
  0x8e   :  { %v138_v44 = vpop.f32.mrf.mxu2  ;;  %v141_v3 = vpop.f32.mrf.mxu3 }
  0x8f   :  { %v1950_v62 = vadd.f32 %v138_v44, %v57_v11  ;;  %v1952_v31 = vadd.f32 %v141_v3, %v57_v11  ;;  %v123_v10 = vpop.f32.mrf.mxu0 }
  0x90   :  { %v161_v12 = vpop.f32.mrf.mxu1  ;;  %v1954_v8 = vadd.f32 %v123_v10, %v57_v11 }
  0x91   :  { %2682 = vst [vmem:[#allocation32_spill] sm:$0xff] %v1950_v62 }
  0x92   :  { %2683 = vst [vmem:[#allocation33_spill] sm:$0xff] %v1952_v31 }
  0x93   :  { %2684 = vst [vmem:[#allocation34_spill] sm:$0xff] %v1954_v8 }
  0x96   :  { %v202_v7 = vpop.f32.mrf.mxu2 }
  0x97   :  { %v243_v1 = vpop.f32.mrf.mxu3  ;;  %v126_v59 = vpop.f32.mrf.mxu0 }
  0x98   :  { %v164_v6 = vpop.f32.mrf.mxu1  ;;  %v1956_v0 = vadd.f32 %v126_v59, %v57_v11 }
  0x99   :  { %v1958_v61 = vadd.f32 %v164_v6, %v58_v58 }
  0x9a   :  { %2685 = vst [vmem:[#allocation35_spill] sm:$0xff] %v1956_v0 }
  0x9b   :  { %2686 = vst [vmem:[#allocation36_spill] sm:$0xff] %v1958_v61 }
  0x9e   :  { %v205_v57 = vpop.f32.mrf.mxu2 }
  0x9f   :  { %v246_v44 = vpop.f32.mrf.mxu3  ;;  %v1960_v62 = vadd.f32 %v205_v57, %v59_v4  ;;  %v129_v31 = vpop.f32.mrf.mxu0 }
  0xa0   :  { %v1962_v3 = vadd.f32 %v246_v44, %v60_v18  ;;  %v167_v10 = vpop.f32.mrf.mxu1  ;;  %v1964_v8 = vadd.f32 %v129_v31, %v57_v11 }
  0xa1   :  { %2687 = vst [vmem:[#allocation37_spill] sm:$0xff] %v1960_v62  ;;  %v1966_v63 = vadd.f32 %v167_v10, %v58_v58 }
  0xa2   :  { %2688 = vst [vmem:[#allocation38_spill] sm:$0xff] %v1962_v3 }
  0xa3   :  { %2689 = vst [vmem:[#allocation39_spill] sm:$0xff] %v1964_v8 }
  0xa4   :  { %2690 = vst [vmem:[#allocation40_spill] sm:$0xff] %v1966_v63 }
  0xa6   :  { %v208_v60 = vpop.f32.mrf.mxu2 }
  0xa7   :  { %v249_v55 = vpop.f32.mrf.mxu3  ;;  %v1968_v59 = vadd.f32 %v208_v60, %v59_v4 }
  0xa8   :  { %v1970_v6 = vadd.f32 %v249_v55, %v60_v18  ;;  %v170_v0 = vpop.f32.mrf.mxu1  ;;  %v132_v2 = vpop.f32.mrf.mxu0 }
  0xa9   :  { %2691 = vst [vmem:[#allocation41_spill] sm:$0xff] %v1968_v59  ;;  %v1972_v61 = vadd.f32 %v170_v0, %v58_v58  ;;  %v1974_v57 = vadd.f32 %v132_v2, %v57_v11 }
  0xaa   :  { %2692 = vst [vmem:[#allocation42_spill] sm:$0xff] %v1970_v6 }
  0xab   :  { %2693 = vst [vmem:[#allocation43_spill] sm:$0xff] %v1972_v61 }
  0xac   :  { %2694 = vst [vmem:[#allocation44_spill] sm:$0xff] %v1974_v57 }
  0xaf   :  { %v211_v44 = vpop.f32.mrf.mxu2  ;;  %v252_v62 = vpop.f32.mrf.mxu3 }
  0xb0   :  { %v1976_v3 = vadd.f32 %v211_v44, %v59_v4  ;;  %v173_v31 = vpop.f32.mrf.mxu1  ;;  %v1978_v8 = vadd.f32 %v252_v62, %v60_v18 }
  0xb1   :  { %v1980_v10 = vadd.f32 %v173_v31, %v58_v58  ;;  %v384_v31 = vpop.f32.mrf.mxu0 }
  0xb2   :  { %2695 = vst [vmem:[#allocation45_spill] sm:$0xff] %v1976_v3 }
  0xb3   :  { %2696 = vst [vmem:[#allocation46_spill] sm:$0xff] %v1978_v8  ;;  %v121_v8 = vadd.f32 %v120_v5, %v57_v11  ;;  %v203_v5 = vadd.f32 %v202_v7, %v59_v4 }
  0xb4   :  { %2697 = vst [vmem:[#allocation47_spill] sm:$0xff] %v1980_v10 }
  0xb7   :  { %v214_v63 = vpop.f32.mrf.mxu2 }
  0xb8   :  { %v1982_v60 = vadd.f32 %v214_v63, %v59_v4  ;;  %v255_v55 = vpop.f32.mrf.mxu3  ;;  %v176_v6 = vpop.f32.mrf.mxu1 }
  0xb9   :  { %v1984_v59 = vadd.f32 %v255_v55, %v60_v18  ;;  %v1986_v0 = vadd.f32 %v176_v6, %v58_v58 }
  0xba   :  { %2698 = vst [vmem:[#allocation48_spill] sm:$0xff] %v1982_v60 }
  0xbb   :  { %2699 = vst [vmem:[#allocation49_spill] sm:$0xff] %v1984_v59 }
  0xbc   :  { %2700 = vst [vmem:[#allocation50_spill] sm:$0xff] %v1986_v0  ;;  %v447_v0 = vadd.f32 %v384_v31, %v121_v8 }
  0xbf   :  { %v217_v2 = vpop.f32.mrf.mxu2 }
  0xc0   :  { %v1988_v57 = vadd.f32 %v217_v2, %v59_v4  ;;  %v258_v44 = vpop.f32.mrf.mxu3  ;;  %v179_v3 = vpop.f32.mrf.mxu1  ;;  %v451_v2 = vmul.f32 0.5, %v447_v0 }
  0xc1   :  { %v1990_v61 = vadd.f32 %v258_v44, %v60_v18  ;;  %v1992_v62 = vadd.f32 %v179_v3, %v58_v58 }
  0xc2   :  { %2701 = vst [vmem:[#allocation51_spill] sm:$0xff] %v1988_v57  ;;  %v162_v57 = vadd.f32 %v161_v12, %v58_v58  ;;  %1304 = vtanh.f32 %v451_v2 }
  0xc3   :  { %2702 = vst [vmem:[#allocation52_spill] sm:$0xff] %v1990_v61 }
  0xc4   :  { %2703 = vst [vmem:[#allocation53_spill] sm:$0xff] %v1992_v62 }
  0xc7   :  { %v220_v10 = vpop.f32.mrf.mxu2 }
  0xc8   :  { %v1994_v63 = vadd.f32 %v220_v10, %v59_v4  ;;  %v261_v60 = vpop.f32.mrf.mxu3  ;;  %v182_v53 = vpop.f32.mrf.mxu1  ;;  %v244_v10 = vadd.f32 %v243_v1, %v60_v18 }
  0xc9   :  { %v1996_v55 = vadd.f32 %v261_v60, %v60_v18  ;;  %v1998_v6 = vadd.f32 %v182_v53, %v58_v58 }
  0xca   :  { %2704 = vst [vmem:[#allocation54_spill] sm:$0xff] %v1994_v63  ;;  %v2732_v63 = vld [vmem:[#allocation28_spill] sm:$0xff] }
  0xcb   :  { %2705 = vst [vmem:[#allocation55_spill] sm:$0xff] %v1996_v55  ;;  %v1305_v55 = vpop.eup %1304 }
  0xcc   :  { %2706 = vst [vmem:[#allocation56_spill] sm:$0xff] %v1998_v6  ;;  %v453_v58 = vmul.f32 0.5, %v1305_v55  ;;  %v2710_v55 = vld [vmem:[#allocation6_spill] sm:$0xff] }
  0xcf   :  { %v223_v59 = vpop.f32.mrf.mxu2 }
  0xd0   :  { %v2000_v56 = vadd.f32 %v223_v59, %v59_v4  ;;  %v264_v44 = vpop.f32.mrf.mxu3  ;;  %v404_v3 = vpop.f32.mrf.mxu1 }
  0xd1   :  { %v2002_v62 = vadd.f32 %v264_v44, %v60_v18  ;;  %v448_v61 = vadd.f32 %v404_v3, %v162_v57  ;;  %v454_v44 = vadd.f32 0.5, %v453_v58  ;;  %v2719_v58 = vld [vmem:[#allocation16_spill] sm:$0xff] }
  0xd2   :  { %2707 = vst [vmem:[#allocation57_spill] sm:$0xff] %v2000_v56  ;;  %v2731_v56 = vld [vmem:[#allocation27_spill] sm:$0xff] }
  0xd3   :  { %2708 = vst [vmem:[#allocation58_spill] sm:$0xff] %v2002_v62  ;;  %v455_v11 = vmul.f32 0.5, %v448_v61 }
  0xd5   :  { %1306 = vtanh.f32 %v455_v11  ;;  %v2712_v11 = vld [vmem:[#allocation11_spill] sm:$0xff] }
  0xd7   :  { %v424_v60 = vpop.f32.mrf.mxu2 }
  0xd8   :  { %v449_v53 = vadd.f32 %v424_v60, %v203_v5  ;;  %v444_v6 = vpop.f32.mrf.mxu3  ;;  %v2713_v5 = vld [vmem:[#allocation14_spill] sm:$0xff]  ;;  %v2715_v60 = vld [vmem:[#allocation12_spill] sm:$0xff] }
  0xd9   :  { %v450_v8 = vadd.f32 %v444_v6, %v244_v10  ;;  %v2711_v6 = vld [vmem:[#allocation7_spill] sm:$0xff]  ;;  %v2714_v10 = vld [vmem:[#allocation9_spill] sm:$0xff] }
  0xda   :  { %1308 = vtanh.f32 %v449_v53  ;;  %v2716_v53 = vld [vmem:[#allocation15_spill] sm:$0xff] }
  0xdb   :  { %v1307_v12 = vpop.eup %1306  ;;  %v460_v59 = vmul.f32 0.5, %v450_v8  ;;  %v2717_v8 = vld [vmem:[#allocation18_spill] sm:$0xff] }
  0xdc   :  { %v457_v0 = vmul.f32 0.5, %v1307_v12  ;;  %v2718_v12 = vld [vmem:[#allocation10_spill] sm:$0xff] }
  0xdd   :  { %1310 = vtanh.f32 %v460_v59  ;;  %v2720_v59 = vld [vmem:[#allocation19_spill] sm:$0xff] }
  0xde   :  { %v458_v31 = vadd.f32 0.5, %v457_v0  ;;  %v2721_v0 = vld [vmem:[#allocation23_spill] sm:$0xff] }
  0xe0   :  { %v1309_v62 = vpop.eup %1308  ;;  %v464_v57 = vmul.f32 0.0, %v458_v31  ;;  %v2722_v31 = vld [vmem:[#allocation13_spill] sm:$0xff] }
  0xe1   :  { %v465_v2 = vmul.f32 %v1309_v62, %v454_v44  ;;  %v2709_v62 = vld [vmem:[#allocation8_spill] sm:$0xff] }
  0xe2   :  { %v2723_v44 = vld [vmem:[#allocation20_spill] sm:$0xff] }
  0xe3   :  { %v1311_v61 = vpop.eup %1310  ;;  %v2004_v3 = vadd.f32 %v465_v2, %v464_v57  ;;  %v2724_v57 = vld [vmem:[#allocation22_spill] sm:$0xff] }
  0xe4   :  { %v462_v1 = vmul.f32 0.5, %v1311_v61  ;;  %v2725_v2 = vld [vmem:[#allocation26_spill] sm:$0xff]  ;;  %v2726_v61 = vld [vmem:[#allocation17_spill] sm:$0xff] }
  0xe5   :  { %1312 = vtanh.f32 %v2004_v3 }
  0xe6   :  { %v463_v7 = vadd.f32 0.5, %v462_v1  ;;  %v2727_v1 = vld [vmem:[#allocation24_spill] sm:$0xff] }
  0xeb   :  { %v1313_v18 = vpop.eup %1312 }
  0xec   :  { %v468_v4 = vmul.f32 %v1313_v18, %v463_v7  ;;  %v2728_v7 = vld [vmem:[#allocation25_spill] sm:$0xff] }
  0xed   :  { %v2729_v18 = vld [vmem:[#allocation29_spill] sm:$0xff] }
  0xee   :  { %489 = vmatmul.f32.vlgmr.msra.gmra.mxu0 %v468_v4  ;;  %509 = vmatmul.f32.vlgmr.msrb.gmra.mxu1 %v468_v4 }
  0xef   :  { %529 = vmatmul.f32.vlgmr.msrb.gmra.mxu2 %v468_v4  ;;  %549 = vmatmul.f32.vlgmr.msrb.gmra.mxu3 %v468_v4  ;;  %v2730_v4 = vld [vmem:[#allocation21_spill] sm:$0xff] }
  0xf0   :  { %685 = vmatpush.msra.mxu0 %v1556_v9  ;;  %705 = vmatpush.msrb.mxu1 %v1573_v13 }
  0xf1   :  { %725 = vmatpush.msrb.mxu2 %v1576_v14  ;;  %745 = vmatpush.msrb.mxu3 %v1583_v17 }
  0xf2   :  { %686 = vmatpush.msra.mxu0 %v1579_v15  ;;  %706 = vmatpush.msrb.mxu1 %v1581_v16 }
  0xf3   :  { %726 = vmatpush.msrb.mxu2 %v1592_v19  ;;  %746 = vmatpush.msrb.mxu3 %v1601_v22 }
  0xf4   :  { %687 = vmatpush.msra.mxu0 %v1594_v20  ;;  %707 = vmatpush.msrb.mxu1 %v1599_v21 }
  0xf5   :  { %727 = vmatpush.msrb.mxu2 %v1607_v24  ;;  %747 = vmatpush.msrb.mxu3 %v1613_v26 }
  0xf6   :  { %688 = vmatpush.msra.mxu0 %v1605_v23  ;;  %708 = vmatpush.msrb.mxu1 %v1611_v25 }
  0xf7   :  { %728 = vmatpush.msrb.mxu2 %v1619_v28  ;;  %748 = vmatpush.msrb.mxu3 %v1625_v30 }
  0xf8   :  { %689 = vmatpush.msra.mxu0 %v1616_v27  ;;  %709 = vmatpush.msrb.mxu1 %v1623_v29 }
  0xf9   :  { %729 = vmatpush.msrb.mxu2 %v1637_v33  ;;  %749 = vmatpush.msrb.mxu3 %v1644_v35 }
  0xfa   :  { %690 = vmatpush.msra.mxu0 %v1634_v32  ;;  %710 = vmatpush.msrb.mxu1 %v1642_v34 }
  0xfb   :  { %730 = vmatpush.msrb.mxu2 %v1650_v37  ;;  %750 = vmatpush.msrb.mxu3 %v1656_v39 }
  0xfc   :  { %691 = vmatpush.msra.mxu0 %v1648_v36  ;;  %711 = vmatpush.msrb.mxu1 %v1654_v38 }
  0xfd   :  { %731 = vmatpush.msrb.mxu2 %v1662_v41  ;;  %751 = vmatpush.msrb.mxu3 %v1668_v43 }
  0xfe   :  { %692 = vmatpush.msra.mxu0 %v1658_v40  ;;  %712 = vmatpush.msrb.mxu1 %v1666_v42 }
  0xff   :  { %732 = vmatpush.msrb.mxu2 %v1680_v46  ;;  %752 = vmatpush.msrb.mxu3 %v1687_v48 }
 0x100   :  { %693 = vmatpush.msra.mxu0 %v1677_v45  ;;  %713 = vmatpush.msrb.mxu1 %v1685_v47 }
 0x101   :  { %733 = vmatpush.msrb.mxu2 %v1693_v50  ;;  %753 = vmatpush.msrb.mxu3 %v1699_v52 }
 0x102   :  { %694 = vmatpush.msra.mxu0 %v1691_v49  ;;  %714 = vmatpush.msrb.mxu1 %v1697_v51 }
 0x103   :  { %734 = vmatpush.msrb.mxu2 %v1705_v54  ;;  %754 = vmatpush.msrb.mxu3 %v2709_v62 }
 0x104   :  { %695 = vmatpush.msra.mxu0 %v2710_v55  ;;  %715 = vmatpush.msrb.mxu1 %v2711_v6 }
 0x105   :  { %735 = vmatpush.msrb.mxu2 %v2712_v11  ;;  %755 = vmatpush.msrb.mxu3 %v2713_v5 }
 0x106   :  { %696 = vmatpush.msra.mxu0 %v2714_v10  ;;  %716 = vmatpush.msrb.mxu1 %v2715_v60 }
 0x107   :  { %736 = vmatpush.msrb.mxu2 %v2716_v53  ;;  %756 = vmatpush.msrb.mxu3 %v2717_v8  ;;  %v2737_v8 = vld [vmem:[#allocation38_spill] sm:$0xff] }
 0x108   :  { %697 = vmatpush.msra.mxu0 %v2718_v12  ;;  %717 = vmatpush.msrb.mxu1 %v2719_v58  ;;  %v2736_v12 = vld [vmem:[#allocation37_spill] sm:$0xff] }
 0x109   :  { %737 = vmatpush.msrb.mxu2 %v2720_v59  ;;  %757 = vmatpush.msrb.mxu3 %v2721_v0  ;;  %v2734_v0 = vld [vmem:[#allocation34_spill] sm:$0xff]  ;;  %v2735_v59 = vld [vmem:[#allocation36_spill] sm:$0xff] }
 0x10a   :  { %698 = vmatpush.msra.mxu0 %v2722_v31  ;;  %718 = vmatpush.msrb.mxu1 %v2723_v44  ;;  %v2733_v31 = vld [vmem:[#allocation30_spill] sm:$0xff] }
 0x10b   :  { %738 = vmatpush.msrb.mxu2 %v2724_v57  ;;  %758 = vmatpush.msrb.mxu3 %v2725_v2 }
 0x10c   :  { %699 = vmatpush.msra.mxu0 %v2726_v61  ;;  %719 = vmatpush.msrb.mxu1 %v2727_v1 }
 0x10d   :  { %739 = vmatpush.msrb.mxu2 %v2728_v7  ;;  %759 = vmatpush.msrb.mxu3 %v2729_v18 }
 0x10e   :  { %700 = vmatpush.msra.mxu0 %v2730_v4  ;;  %720 = vmatpush.msrb.mxu1 %v2731_v56 }
 0x10f   :  { %740 = vmatpush.msrb.mxu2 %v2732_v63  ;;  %760 = vmatpush.msrb.mxu3 %v2733_v31 }
 0x16b   :  { %v490_v44 = vpop.f32.mrf.mxu0  ;;  %v510_v57 = vpop.f32.mrf.mxu1 }
 0x16c   :  { %v553_v2 = vadd.f32 %v490_v44, %v2734_v0  ;;  %v554_v61 = vadd.f32 %v510_v57, %v2735_v59 }
 0x16e   :  { %v557_v58 = vmul.f32 0.5, %v553_v2  ;;  %v561_v1 = vmul.f32 0.5, %v554_v61 }
 0x170   :  { %1314 = vtanh.f32 %v557_v58 }
 0x171   :  { %1316 = vtanh.f32 %v561_v1 }
 0x172   :  { %v530_v7 = vpop.f32.mrf.mxu2  ;;  %v550_v18 = vpop.f32.mrf.mxu3 }
 0x173   :  { %v555_v4 = vadd.f32 %v530_v7, %v2736_v12  ;;  %v556_v56 = vadd.f32 %v550_v18, %v2737_v8  ;;  %v2151_v7 = vld [vmem:[#allocation3 + $0x1e0] sm:$0xff]  ;;  %v2154_v18 = vld [vmem:[#allocation3 + $0x1e8] sm:$0xff] }
 0x175   :  { %1318 = vtanh.f32 %v555_v4  ;;  %v566_v63 = vmul.f32 0.5, %v556_v56  ;;  %v2157_v4 = vld [vmem:[#allocation3 + $0x1f0] sm:$0xff] }
 0x176   :  { %v1315_v53 = vpop.eup %1314 }
 0x177   :  { %v1317_v31 = vpop.eup %1316  ;;  %v559_v60 = vmul.f32 0.5, %v1315_v53  ;;  %1320 = vtanh.f32 %v566_v63 }
 0x178   :  { %v563_v10 = vmul.f32 0.5, %v1317_v31 }
 0x179   :  { %v560_v0 = vadd.f32 0.5, %v559_v60 }
 0x17a   :  { %v564_v44 = vadd.f32 0.5, %v563_v10 }
 0x17b   :  { %v1319_v59 = vpop.eup %1318 }
 0x17c   :  { %v570_v57 = vmul.f32 %v564_v44, %v2004_v3  ;;  %v571_v58 = vmul.f32 %v1319_v59, %v560_v0  ;;  %v2160_v0 = vld [vmem:[#allocation3 + $0x1f8] sm:$0xff]  ;;  %v2163_v44 = vld [vmem:[#allocation3 + $0x1c0] sm:$0xff]  ;;  %v2166_v59 = vld [vmem:[#allocation3 + $0x1c8] sm:$0xff] }
 0x17d   :  { %v1321_v2 = vpop.eup %1320 }
 0x17e   :  { %v2076_v61 = vadd.f32 %v571_v58, %v570_v57  ;;  %v568_v12 = vmul.f32 0.5, %v1321_v2  ;;  %v2169_v57 = vld [vmem:[#allocation3 + $0x1d0] sm:$0xff]  ;;  %v2172_v58 = vld [vmem:[#allocation3 + $0x1d8] sm:$0xff]  ;;  %v2175_v2 = vld [vmem:[#allocation3 + $0x1a0] sm:$0xff] }
 0x180   :  { %1322 = vtanh.f32 %v2076_v61  ;;  %v569_v8 = vadd.f32 0.5, %v568_v12  ;;  %v2181_v12 = vld [vmem:[#allocation3 + $0x1b0] sm:$0xff] }
 0x186   :  { %v1323_v1 = vpop.eup %1322 }
 0x187   :  { %v574_v56 = vmul.f32 %v1323_v1, %v569_v8  ;;  %v2184_v8 = vld [vmem:[#allocation3 + $0x1b8] sm:$0xff]  ;;  %v2187_v1 = vld [vmem:[#allocation3 + $0x180] sm:$0xff] }
 0x189   :  { %595 = vmatmul.f32.vlgmr.msrb.gmra.mxu0 %v574_v56  ;;  %615 = vmatmul.f32.vlgmr.msra.gmra.mxu1 %v574_v56 }
 0x18a   :  { %635 = vmatmul.f32.vlgmr.msra.gmra.mxu2 %v574_v56  ;;  %655 = vmatmul.f32.vlgmr.msra.gmra.mxu3 %v574_v56  ;;  %v2190_v56 = vld [vmem:[#allocation3 + $0x188] sm:$0xff] }
 0x18b   :  { %791 = vmatpush.msrb.mxu0 %v1556_v9  ;;  %811 = vmatpush.msra.mxu1 %v1573_v13  ;;  %v2738_v9 = vld [vmem:[#allocation9_spill] sm:$0xff]  ;;  %v2739_v13 = vld [vmem:[#allocation12_spill] sm:$0xff] }
 0x18c   :  { %831 = vmatpush.msra.mxu2 %v1576_v14  ;;  %851 = vmatpush.msra.mxu3 %v1583_v17  ;;  %v2740_v14 = vld [vmem:[#allocation15_spill] sm:$0xff]  ;;  %v2743_v17 = vld [vmem:[#allocation16_spill] sm:$0xff] }
 0x18d   :  { %792 = vmatpush.msrb.mxu0 %v1579_v15  ;;  %812 = vmatpush.msra.mxu1 %v1581_v16  ;;  %v2741_v15 = vld [vmem:[#allocation18_spill] sm:$0xff] }
 0x18e   :  { %832 = vmatpush.msra.mxu2 %v1592_v19  ;;  %852 = vmatpush.msra.mxu3 %v1601_v22  ;;  %v2742_v16 = vld [vmem:[#allocation10_spill] sm:$0xff]  ;;  %v2744_v19 = vld [vmem:[#allocation19_spill] sm:$0xff]  ;;  %v2747_v22 = vld [vmem:[#allocation20_spill] sm:$0xff] }
 0x18f   :  { %793 = vmatpush.msrb.mxu0 %v1594_v20  ;;  %813 = vmatpush.msra.mxu1 %v1599_v21  ;;  %v2745_v20 = vld [vmem:[#allocation23_spill] sm:$0xff]  ;;  %v2746_v21 = vld [vmem:[#allocation13_spill] sm:$0xff] }
 0x190   :  { %833 = vmatpush.msra.mxu2 %v1607_v24  ;;  %853 = vmatpush.msra.mxu3 %v1613_v26  ;;  %v2749_v24 = vld [vmem:[#allocation26_spill] sm:$0xff]  ;;  %v2751_v26 = vld [vmem:[#allocation24_spill] sm:$0xff] }
 0x191   :  { %794 = vmatpush.msrb.mxu0 %v1605_v23  ;;  %814 = vmatpush.msra.mxu1 %v1611_v25  ;;  %v2748_v23 = vld [vmem:[#allocation22_spill] sm:$0xff]  ;;  %v2750_v25 = vld [vmem:[#allocation17_spill] sm:$0xff] }
 0x192   :  { %834 = vmatpush.msra.mxu2 %v1619_v28  ;;  %854 = vmatpush.msra.mxu3 %v1625_v30  ;;  %v2753_v28 = vld [vmem:[#allocation29_spill] sm:$0xff]  ;;  %v2755_v30 = vld [vmem:[#allocation27_spill] sm:$0xff] }
 0x193   :  { %795 = vmatpush.msrb.mxu0 %v1616_v27  ;;  %815 = vmatpush.msra.mxu1 %v1623_v29  ;;  %v2752_v27 = vld [vmem:[#allocation25_spill] sm:$0xff] }
 0x194   :  { %835 = vmatpush.msra.mxu2 %v1637_v33  ;;  %855 = vmatpush.msra.mxu3 %v1644_v35  ;;  %v2754_v29 = vld [vmem:[#allocation21_spill] sm:$0xff]  ;;  %v2757_v33 = vld [vmem:[#allocation30_spill] sm:$0xff] }
 0x195   :  { %796 = vmatpush.msrb.mxu0 %v1634_v32  ;;  %816 = vmatpush.msra.mxu1 %v1642_v34  ;;  %v2756_v32 = vld [vmem:[#allocation28_spill] sm:$0xff] }
 0x196   :  { %836 = vmatpush.msra.mxu2 %v1650_v37  ;;  %856 = vmatpush.msra.mxu3 %v1656_v39 }
 0x197   :  { %797 = vmatpush.msrb.mxu0 %v1648_v36  ;;  %817 = vmatpush.msra.mxu1 %v1654_v38  ;;  %v2758_v36 = vld [vmem:[#allocation35_spill] sm:$0xff]  ;;  %v2759_v38 = vld [vmem:[#allocation40_spill] sm:$0xff] }
 0x198   :  { %837 = vmatpush.msra.mxu2 %v1662_v41  ;;  %857 = vmatpush.msra.mxu3 %v1668_v43 }
 0x199   :  { %798 = vmatpush.msrb.mxu0 %v1658_v40  ;;  %818 = vmatpush.msra.mxu1 %v1666_v42 }
 0x19a   :  { %838 = vmatpush.msra.mxu2 %v1680_v46  ;;  %858 = vmatpush.msra.mxu3 %v1687_v48 }
 0x19b   :  { %799 = vmatpush.msrb.mxu0 %v1677_v45  ;;  %819 = vmatpush.msra.mxu1 %v1685_v47  ;;  %v2760_v45 = vld [vmem:[#allocation41_spill] sm:$0xff]  ;;  %v2761_v47 = vld [vmem:[#allocation42_spill] sm:$0xff] }
 0x19c   :  { %839 = vmatpush.msra.mxu2 %v1693_v50  ;;  %859 = vmatpush.msra.mxu3 %v1699_v52 }
 0x19d   :  { %800 = vmatpush.msrb.mxu0 %v1691_v49  ;;  %820 = vmatpush.msra.mxu1 %v1697_v51 }
 0x19e   :  { %840 = vmatpush.msra.mxu2 %v1705_v54  ;;  %860 = vmatpush.msra.mxu3 %v2709_v62 }
 0x19f   :  { %801 = vmatpush.msrb.mxu0 %v2710_v55  ;;  %821 = vmatpush.msra.mxu1 %v2711_v6 }
 0x1a0   :  { %841 = vmatpush.msra.mxu2 %v2712_v11  ;;  %861 = vmatpush.msra.mxu3 %v2713_v5 }
 0x1a1   :  { %802 = vmatpush.msrb.mxu0 %v2738_v9  ;;  %822 = vmatpush.msra.mxu1 %v2739_v13  ;;  %v2193_v9 = vld [vmem:[#allocation3 + $0x190] sm:$0xff]  ;;  %v2196_v13 = vld [vmem:[#allocation3 + $0x198] sm:$0xff] }
 0x1a2   :  { %842 = vmatpush.msra.mxu2 %v2740_v14  ;;  %862 = vmatpush.msra.mxu3 %v2741_v15  ;;  %v2199_v14 = vld [vmem:[#allocation3 + $0x160] sm:$0xff]  ;;  %v2202_v15 = vld [vmem:[#allocation3 + $0x168] sm:$0xff] }
 0x1a3   :  { %803 = vmatpush.msrb.mxu0 %v2742_v16  ;;  %823 = vmatpush.msra.mxu1 %v2743_v17  ;;  %v2205_v16 = vld [vmem:[#allocation3 + $0x170] sm:$0xff]  ;;  %v2208_v17 = vld [vmem:[#allocation3 + $0x178] sm:$0xff] }
 0x1a4   :  { %843 = vmatpush.msra.mxu2 %v2744_v19  ;;  %863 = vmatpush.msra.mxu3 %v2745_v20  ;;  %v2211_v19 = vld [vmem:[#allocation3 + $0x140] sm:$0xff]  ;;  %v2214_v20 = vld [vmem:[#allocation3 + $0x148] sm:$0xff] }
 0x1a5   :  { %804 = vmatpush.msrb.mxu0 %v2746_v21  ;;  %824 = vmatpush.msra.mxu1 %v2747_v22  ;;  %v2217_v21 = vld [vmem:[#allocation3 + $0x150] sm:$0xff]  ;;  %v2220_v22 = vld [vmem:[#allocation3 + $0x158] sm:$0xff] }
 0x1a6   :  { %844 = vmatpush.msra.mxu2 %v2748_v23  ;;  %864 = vmatpush.msra.mxu3 %v2749_v24  ;;  %v2223_v23 = vld [vmem:[#allocation3 + $0x120] sm:$0xff] }
 0x1a7   :  { %805 = vmatpush.msrb.mxu0 %v2750_v25  ;;  %825 = vmatpush.msra.mxu1 %v2751_v26  ;;  %v2226_v25 = vld [vmem:[#allocation3 + $0x128] sm:$0xff]  ;;  %v2229_v26 = vld [vmem:[#allocation3 + $0x130] sm:$0xff] }
 0x1a8   :  { %845 = vmatpush.msra.mxu2 %v2752_v27  ;;  %865 = vmatpush.msra.mxu3 %v2753_v28  ;;  %v2232_v27 = vld [vmem:[#allocation3 + $0x138] sm:$0xff] }
 0x1a9   :  { %806 = vmatpush.msrb.mxu0 %v2754_v29  ;;  %826 = vmatpush.msra.mxu1 %v2755_v30  ;;  %v2235_v29 = vld [vmem:[#allocation3 + $0x100] sm:$0xff]  ;;  %v2238_v30 = vld [vmem:[#allocation3 + $0x108] sm:$0xff] }
 0x1aa   :  { %846 = vmatpush.msra.mxu2 %v2756_v32  ;;  %866 = vmatpush.msra.mxu3 %v2757_v33  ;;  %v2241_v32 = vld [vmem:[#allocation3 + $0x110] sm:$0xff] }
 0x206   :  { %v596_v34 = vpop.f32.mrf.mxu0  ;;  %v616_v35 = vpop.f32.mrf.mxu1 }
 0x207   :  { %v659_v37 = vadd.f32 %v596_v34, %v2758_v36  ;;  %v660_v39 = vadd.f32 %v616_v35, %v2759_v38  ;;  %v2244_v34 = vld [vmem:[#allocation3 + $0x118] sm:$0xff]  ;;  %v2247_v35 = vld [vmem:[#allocation3 + $0xe0] sm:$0xff]  ;;  %v2250_v36 = vld [vmem:[#allocation3 + $0xe8] sm:$0xff] }
 0x208   :  { %v2256_v38 = vld [vmem:[#allocation3 + $0xf8] sm:$0xff] }
 0x209   :  { %v663_v40 = vmul.f32 0.5, %v659_v37  ;;  %v667_v41 = vmul.f32 0.5, %v660_v39  ;;  %v2253_v37 = vld [vmem:[#allocation3 + $0xf0] sm:$0xff]  ;;  %v2259_v39 = vld [vmem:[#allocation3 + $0xc0] sm:$0xff] }
 0x20b   :  { %1324 = vtanh.f32 %v663_v40  ;;  %v2262_v40 = vld [vmem:[#allocation3 + $0xc8] sm:$0xff] }
 0x20c   :  { %1326 = vtanh.f32 %v667_v41  ;;  %v2265_v41 = vld [vmem:[#allocation3 + $0xd0] sm:$0xff] }
 0x20d   :  { %v636_v42 = vpop.f32.mrf.mxu2  ;;  %v656_v43 = vpop.f32.mrf.mxu3 }
 0x20e   :  { %v661_v46 = vadd.f32 %v636_v42, %v2760_v45  ;;  %v662_v48 = vadd.f32 %v656_v43, %v2761_v47  ;;  %v2268_v42 = vld [vmem:[#allocation3 + $0xd8] sm:$0xff]  ;;  %v2271_v43 = vld [vmem:[#allocation3 + $0xa0] sm:$0xff]  ;;  %v2274_v45 = vld [vmem:[#allocation3 + $0xa8] sm:$0xff] }
 0x20f   :  { %v2280_v47 = vld [vmem:[#allocation3 + $0xb8] sm:$0xff] }
 0x210   :  { %1328 = vtanh.f32 %v661_v46  ;;  %v672_v49 = vmul.f32 0.5, %v662_v48  ;;  %v2277_v46 = vld [vmem:[#allocation3 + $0xb0] sm:$0xff]  ;;  %v2283_v48 = vld [vmem:[#allocation3 + $0x80] sm:$0xff] }
 0x211   :  { %v1325_v50 = vpop.eup %1324  ;;  %2762 = vst [vmem:[#allocation8_spill] sm:$0xff] %v2283_v48 }
 0x212   :  { %v1327_v51 = vpop.eup %1326  ;;  %v665_v52 = vmul.f32 0.5, %v1325_v50  ;;  %1330 = vtanh.f32 %v672_v49  ;;  %v2286_v49 = vld [vmem:[#allocation3 + $0x88] sm:$0xff]  ;;  %v2289_v50 = vld [vmem:[#allocation3 + $0x90] sm:$0xff] }
 0x213   :  { %v669_v54 = vmul.f32 0.5, %v1327_v51  ;;  %2763 = vst [vmem:[#allocation6_spill] sm:$0xff] %v2286_v49  ;;  %v2292_v51 = vld [vmem:[#allocation3 + $0x98] sm:$0xff] }
 0x214   :  { %v666_v63 = vadd.f32 0.5, %v665_v52  ;;  %2764 = vst [vmem:[#allocation7_spill] sm:$0xff] %v2289_v50  ;;  %v2295_v52 = vld [vmem:[#allocation3 + $0x60] sm:$0xff] }
 0x215   :  { %v670_v3 = vadd.f32 0.5, %v669_v54  ;;  %2765 = vst [vmem:[#allocation11_spill] sm:$0xff] %v2292_v51  ;;  %v2298_v54 = vld [vmem:[#allocation3 + $0x68] sm:$0xff] }
 0x216   :  { %v1329_v62 = vpop.eup %1328  ;;  %2766 = vst [vmem:[#allocation14_spill] sm:$0xff] %v2295_v52 }
 0x217   :  { %v676_v55 = vmul.f32 %v670_v3, %v2076_v61  ;;  %v677_v6 = vmul.f32 %v1329_v62, %v666_v63  ;;  %v2178_v61 = vld [vmem:[#allocation3 + $0x1a8] sm:$0xff]  ;;  %2767 = vst [vmem:[#allocation34_spill] sm:$0xff] %v2298_v54  ;;  %v2301_v63 = vld [vmem:[#allocation3 + $0x70] sm:$0xff]  ;;  %v2304_v3 = vld [vmem:[#allocation3 + $0x78] sm:$0xff] }
 0x218   :  { %v1331_v11 = vpop.eup %1330  ;;  %2768 = vst [vmem:[#allocation36_spill] sm:$0xff] %v2301_v63  ;;  %v2307_v62 = vld [vmem:[#allocation3 + $0x40] sm:$0xff] }
 0x219   :  { %v2148_v5 = vadd.f32 %v677_v6, %v676_v55  ;;  %v674_v10 = vmul.f32 0.5, %v1331_v11  ;;  %2769 = vst [vmem:[#allocation37_spill] sm:$0xff] %v2304_v3  ;;  %v2310_v55 = vld [vmem:[#allocation3 + $0x48] sm:$0xff]  ;;  %v2313_v6 = vld [vmem:[#allocation3 + $0x50] sm:$0xff]  ;;  %v2317_v11 = vld [vmem:[#allocation3 + $0x20] sm:$0xff] }
 0x21a   :  { %2770 = vst [vmem:[#allocation38_spill] sm:$0xff] %v2307_v62 }
 0x21b   :  { %1332 = vtanh.f32 %v2148_v5  ;;  %v675_v60 = vadd.f32 0.5, %v674_v10  ;;  %2771 = vst [vmem:[#allocation9_spill] sm:$0xff] %v2310_v55  ;;  %v2320_v10 = vld [vmem:[#allocation3 + $0x28] sm:$0xff] }
 0x21c   :  { %2772 = vst [vmem:[#allocation12_spill] sm:$0xff] %v2313_v6 }
 0x21d   :  { %2773 = vst [vmem:[#allocation15_spill] sm:$0xff] %v2317_v11 }
 0x21e   :  { %2774 = vst [vmem:[#allocation18_spill] sm:$0xff] %v2320_v10 }
 0x221   :  { %v1333_v53 = vpop.eup %1332 }
 0x222   :  { %v680_v31 = vmul.f32 %v1333_v53, %v675_v60  ;;  %v2323_v60 = vld [vmem:[#allocation3 + $0x30] sm:$0xff]  ;;  %v2327_v53 = vld [vmem:[#allocation3] sm:$0xff] }
 0x223   :  { %2775 = vst [vmem:[#allocation10_spill] sm:$0xff] %v2323_v60 }
 0x224   :  { %701 = vmatmul.f32.vlgmr.msra.gmra.mxu0 %v680_v31  ;;  %721 = vmatmul.f32.vlgmr.msrb.gmra.mxu1 %v680_v31  ;;  %2776 = vst [vmem:[#allocation16_spill] sm:$0xff] %v2327_v53 }
 0x225   :  { %741 = vmatmul.f32.vlgmr.msrb.gmra.mxu2 %v680_v31  ;;  %761 = vmatmul.f32.vlgmr.msrb.gmra.mxu3 %v680_v31  ;;  %v2330_v31 = vld [vmem:[#allocation3 + $0x8] sm:$0xff] }
 0x226   :  { %897 = vmatpush.msra.mxu0 %v2151_v7  ;;  %917 = vmatpush.msrb.mxu1 %v2154_v18  ;;  %2777 = vst [vmem:[#allocation19_spill] sm:$0xff] %v2330_v31 }
 0x227   :  { %937 = vmatpush.msrb.mxu2 %v2157_v4  ;;  %957 = vmatpush.msrb.mxu3 %v2160_v0 }
 0x228   :  { %898 = vmatpush.msra.mxu0 %v2163_v44  ;;  %918 = vmatpush.msrb.mxu1 %v2166_v59 }
 0x229   :  { %938 = vmatpush.msrb.mxu2 %v2169_v57  ;;  %958 = vmatpush.msrb.mxu3 %v2172_v58 }
 0x22a   :  { %899 = vmatpush.msra.mxu0 %v2175_v2  ;;  %919 = vmatpush.msrb.mxu1 %v2178_v61 }
 0x22b   :  { %939 = vmatpush.msrb.mxu2 %v2181_v12  ;;  %959 = vmatpush.msrb.mxu3 %v2184_v8 }
 0x22c   :  { %900 = vmatpush.msra.mxu0 %v2187_v1  ;;  %920 = vmatpush.msrb.mxu1 %v2190_v56 }
 0x22d   :  { %940 = vmatpush.msrb.mxu2 %v2193_v9  ;;  %960 = vmatpush.msrb.mxu3 %v2196_v13 }
 0x22e   :  { %901 = vmatpush.msra.mxu0 %v2199_v14  ;;  %921 = vmatpush.msrb.mxu1 %v2202_v15 }
 0x22f   :  { %941 = vmatpush.msrb.mxu2 %v2205_v16  ;;  %961 = vmatpush.msrb.mxu3 %v2208_v17 }
 0x230   :  { %902 = vmatpush.msra.mxu0 %v2211_v19  ;;  %922 = vmatpush.msrb.mxu1 %v2214_v20 }
 0x231   :  { %942 = vmatpush.msrb.mxu2 %v2217_v21  ;;  %962 = vmatpush.msrb.mxu3 %v2220_v22 }
 0x232   :  { %903 = vmatpush.msra.mxu0 %v2223_v23  ;;  %923 = vmatpush.msrb.mxu1 %v2226_v25 }
 0x233   :  { %943 = vmatpush.msrb.mxu2 %v2229_v26  ;;  %963 = vmatpush.msrb.mxu3 %v2232_v27 }
 0x234   :  { %904 = vmatpush.msra.mxu0 %v2235_v29  ;;  %924 = vmatpush.msrb.mxu1 %v2238_v30 }
 0x235   :  { %944 = vmatpush.msrb.mxu2 %v2241_v32  ;;  %964 = vmatpush.msrb.mxu3 %v2244_v34 }
 0x236   :  { %905 = vmatpush.msra.mxu0 %v2247_v35  ;;  %925 = vmatpush.msrb.mxu1 %v2250_v36 }
 0x237   :  { %945 = vmatpush.msrb.mxu2 %v2253_v37  ;;  %965 = vmatpush.msrb.mxu3 %v2256_v38 }
 0x238   :  { %906 = vmatpush.msra.mxu0 %v2259_v39  ;;  %926 = vmatpush.msrb.mxu1 %v2262_v40 }
 0x239   :  { %946 = vmatpush.msrb.mxu2 %v2265_v41  ;;  %966 = vmatpush.msrb.mxu3 %v2268_v42 }
 0x23a   :  { %907 = vmatpush.msra.mxu0 %v2271_v43  ;;  %927 = vmatpush.msrb.mxu1 %v2274_v45 }
 0x23b   :  { %947 = vmatpush.msrb.mxu2 %v2277_v46  ;;  %967 = vmatpush.msrb.mxu3 %v2280_v47 }
 0x23c   :  { %908 = vmatpush.msra.mxu0 %v2283_v48  ;;  %928 = vmatpush.msrb.mxu1 %v2286_v49 }
 0x23d   :  { %948 = vmatpush.msrb.mxu2 %v2289_v50  ;;  %968 = vmatpush.msrb.mxu3 %v2292_v51 }
 0x23e   :  { %909 = vmatpush.msra.mxu0 %v2295_v52  ;;  %929 = vmatpush.msrb.mxu1 %v2298_v54  ;;  %v2781_v54 = vld [vmem:[#allocation45_spill] sm:$0xff]  ;;  %v2782_v52 = vld [vmem:[#allocation46_spill] sm:$0xff] }
 0x23f   :  { %949 = vmatpush.msrb.mxu2 %v2301_v63  ;;  %969 = vmatpush.msrb.mxu3 %v2304_v3 }
 0x240   :  { %910 = vmatpush.msra.mxu0 %v2307_v62  ;;  %930 = vmatpush.msrb.mxu1 %v2310_v55  ;;  %v2780_v55 = vld [vmem:[#allocation43_spill] sm:$0xff] }
 0x241   :  { %950 = vmatpush.msrb.mxu2 %v2313_v6  ;;  %970 = vmatpush.msrb.mxu3 %v2749_v24  ;;  %v2333_v24 = vld [vmem:[#allocation3 + $0x10] sm:$0xff]  ;;  %v2779_v6 = vld [vmem:[#allocation39_spill] sm:$0xff] }
 0x242   :  { %911 = vmatpush.msra.mxu0 %v2317_v11  ;;  %931 = vmatpush.msrb.mxu1 %v2320_v10  ;;  %2778 = vst [vmem:[#allocation23_spill] sm:$0xff] %v2333_v24 }
 0x243   :  { %951 = vmatpush.msrb.mxu2 %v2323_v60  ;;  %971 = vmatpush.msrb.mxu3 %v2753_v28 }
 0x244   :  { %912 = vmatpush.msra.mxu0 %v2327_v53  ;;  %932 = vmatpush.msrb.mxu1 %v2330_v31 }
 0x245   :  { %952 = vmatpush.msrb.mxu2 %v2333_v24  ;;  %972 = vmatpush.msrb.mxu3 %v2757_v33 }
 0x2a1   :  { %v702_v10 = vpop.f32.mrf.mxu0  ;;  %v722_v11 = vpop.f32.mrf.mxu1 }
 0x2a2   :  { %v765_v60 = vadd.f32 %v702_v10, %v2779_v6  ;;  %v766_v28 = vadd.f32 %v722_v11, %v2780_v55 }
 0x2a4   :  { %v769_v62 = vmul.f32 0.5, %v765_v60  ;;  %v773_v3 = vmul.f32 0.5, %v766_v28  ;;  %v2790_v28 = vld [vmem:[#allocation37_spill] sm:$0xff] }
 0x2a6   :  { %1334 = vtanh.f32 %v769_v62 }
 0x2a7   :  { %1336 = vtanh.f32 %v773_v3 }
 0x2a8   :  { %v742_v53 = vpop.f32.mrf.mxu2  ;;  %v762_v63 = vpop.f32.mrf.mxu3 }
 0x2a9   :  { %v767_v31 = vadd.f32 %v742_v53, %v2781_v54  ;;  %v768_v51 = vadd.f32 %v762_v63, %v2782_v52  ;;  %v2787_v53 = vld [vmem:[#allocation14_spill] sm:$0xff] }
 0x2ab   :  { %1338 = vtanh.f32 %v767_v31  ;;  %v778_v24 = vmul.f32 0.5, %v768_v51  ;;  %v2788_v31 = vld [vmem:[#allocation34_spill] sm:$0xff] }
 0x2ac   :  { %v1335_v50 = vpop.eup %1334 }
 0x2ad   :  { %v1337_v33 = vpop.eup %1336  ;;  %v771_v49 = vmul.f32 0.5, %v1335_v50  ;;  %1340 = vtanh.f32 %v778_v24  ;;  %v2786_v50 = vld [vmem:[#allocation11_spill] sm:$0xff]  ;;  %v2789_v24 = vld [vmem:[#allocation36_spill] sm:$0xff] }
 0x2ae   :  { %v775_v48 = vmul.f32 0.5, %v1337_v33  ;;  %v2791_v33 = vld [vmem:[#allocation38_spill] sm:$0xff] }
 0x2af   :  { %v772_v6 = vadd.f32 0.5, %v771_v49  ;;  %v2785_v49 = vld [vmem:[#allocation7_spill] sm:$0xff] }
 0x2b0   :  { %v776_v10 = vadd.f32 0.5, %v775_v48  ;;  %v2784_v48 = vld [vmem:[#allocation6_spill] sm:$0xff] }
 0x2b1   :  { %v1339_v55 = vpop.eup %1338 }
 0x2b2   :  { %v782_v11 = vmul.f32 %v776_v10, %v2148_v5  ;;  %v783_v62 = vmul.f32 %v1339_v55, %v772_v6  ;;  %v2783_v5 = vld [vmem:[#allocation8_spill] sm:$0xff]  ;;  %v2792_v6 = vld [vmem:[#allocation9_spill] sm:$0xff] }
 0x2b3   :  { %v1341_v3 = vpop.eup %1340  ;;  %v2793_v10 = vld [vmem:[#allocation12_spill] sm:$0xff]  ;;  %v2400_v55 = vld [vmem:[#allocation3 + $0x58] sm:$0xff] }
 0x2b4   :  { %v2342_v60 = vadd.f32 %v783_v62, %v782_v11  ;;  %v780_v54 = vmul.f32 0.5, %v1341_v3  ;;  %2794 = vst [vmem:[#allocation13_spill] sm:$0xff] %v2400_v55  ;;  %v2795_v11 = vld [vmem:[#allocation15_spill] sm:$0xff]  ;;  %v2796_v62 = vld [vmem:[#allocation18_spill] sm:$0xff] }
 0x2b5   :  { %v2797_v3 = vld [vmem:[#allocation10_spill] sm:$0xff] }
 0x2b6   :  { %1342 = vtanh.f32 %v2342_v60  ;;  %v781_v52 = vadd.f32 0.5, %v780_v54  ;;  %v2406_v54 = vld [vmem:[#allocation3 + $0x38] sm:$0xff] }
 0x2b7   :  { %2798 = vst [vmem:[#allocation20_spill] sm:$0xff] %v2406_v54 }
 0x2bc   :  { %v1343_v63 = vpop.eup %1342 }
 0x2bd   :  { %v786_v51 = vmul.f32 %v1343_v63, %v781_v52  ;;  %v2799_v52 = vld [vmem:[#allocation16_spill] sm:$0xff]  ;;  %v2800_v63 = vld [vmem:[#allocation19_spill] sm:$0xff] }
 0x2bf   :  { %807 = vmatmul.f32.vlgmr.msrb.gmra.mxu0 %v786_v51  ;;  %827 = vmatmul.f32.vlgmr.msra.gmra.mxu1 %v786_v51 }
 0x2c0   :  { %847 = vmatmul.f32.vlgmr.msra.gmra.mxu2 %v786_v51  ;;  %867 = vmatmul.f32.vlgmr.msra.gmra.mxu3 %v786_v51  ;;  %v2801_v51 = vld [vmem:[#allocation23_spill] sm:$0xff] }
 0x2c1   :  { %1003 = vmatpush.msrb.mxu0 %v2151_v7  ;;  %1023 = vmatpush.msra.mxu1 %v2154_v18 }
 0x2c2   :  { %1043 = vmatpush.msra.mxu2 %v2157_v4  ;;  %1063 = vmatpush.msra.mxu3 %v2160_v0 }
 0x2c3   :  { %1004 = vmatpush.msrb.mxu0 %v2163_v44  ;;  %1024 = vmatpush.msra.mxu1 %v2166_v59 }
 0x2c4   :  { %1044 = vmatpush.msra.mxu2 %v2169_v57  ;;  %1064 = vmatpush.msra.mxu3 %v2172_v58 }
 0x2c5   :  { %1005 = vmatpush.msrb.mxu0 %v2175_v2  ;;  %1025 = vmatpush.msra.mxu1 %v2178_v61 }
 0x2c6   :  { %1045 = vmatpush.msra.mxu2 %v2181_v12  ;;  %1065 = vmatpush.msra.mxu3 %v2184_v8 }
 0x2c7   :  { %1006 = vmatpush.msrb.mxu0 %v2187_v1  ;;  %1026 = vmatpush.msra.mxu1 %v2190_v56 }
 0x2c8   :  { %1046 = vmatpush.msra.mxu2 %v2193_v9  ;;  %1066 = vmatpush.msra.mxu3 %v2196_v13 }
 0x2c9   :  { %1007 = vmatpush.msrb.mxu0 %v2199_v14  ;;  %1027 = vmatpush.msra.mxu1 %v2202_v15 }
 0x2ca   :  { %1047 = vmatpush.msra.mxu2 %v2205_v16  ;;  %1067 = vmatpush.msra.mxu3 %v2208_v17 }
 0x2cb   :  { %1008 = vmatpush.msrb.mxu0 %v2211_v19  ;;  %1028 = vmatpush.msra.mxu1 %v2214_v20 }
 0x2cc   :  { %1048 = vmatpush.msra.mxu2 %v2217_v21  ;;  %1068 = vmatpush.msra.mxu3 %v2220_v22 }
 0x2cd   :  { %1009 = vmatpush.msrb.mxu0 %v2223_v23  ;;  %1029 = vmatpush.msra.mxu1 %v2226_v25 }
 0x2ce   :  { %1049 = vmatpush.msra.mxu2 %v2229_v26  ;;  %1069 = vmatpush.msra.mxu3 %v2232_v27 }
 0x2cf   :  { %1010 = vmatpush.msrb.mxu0 %v2235_v29  ;;  %1030 = vmatpush.msra.mxu1 %v2238_v30 }
 0x2d0   :  { %1050 = vmatpush.msra.mxu2 %v2241_v32  ;;  %1070 = vmatpush.msra.mxu3 %v2244_v34 }
 0x2d1   :  { %1011 = vmatpush.msrb.mxu0 %v2247_v35  ;;  %1031 = vmatpush.msra.mxu1 %v2250_v36 }
 0x2d2   :  { %1051 = vmatpush.msra.mxu2 %v2253_v37  ;;  %1071 = vmatpush.msra.mxu3 %v2256_v38 }
 0x2d3   :  { %1012 = vmatpush.msrb.mxu0 %v2259_v39  ;;  %1032 = vmatpush.msra.mxu1 %v2262_v40 }
 0x2d4   :  { %1052 = vmatpush.msra.mxu2 %v2265_v41  ;;  %1072 = vmatpush.msra.mxu3 %v2268_v42 }
 0x2d5   :  { %1013 = vmatpush.msrb.mxu0 %v2271_v43  ;;  %1033 = vmatpush.msra.mxu1 %v2274_v45 }
 0x2d6   :  { %1053 = vmatpush.msra.mxu2 %v2277_v46  ;;  %1073 = vmatpush.msra.mxu3 %v2280_v47 }
 0x2d7   :  { %1014 = vmatpush.msrb.mxu0 %v2783_v5  ;;  %1034 = vmatpush.msra.mxu1 %v2784_v48 }
 0x2d8   :  { %1054 = vmatpush.msra.mxu2 %v2785_v49  ;;  %1074 = vmatpush.msra.mxu3 %v2786_v50 }
 0x2d9   :  { %1015 = vmatpush.msrb.mxu0 %v2787_v53  ;;  %1035 = vmatpush.msra.mxu1 %v2788_v31  ;;  %v2805_v31 = vld [vmem:[#allocation48_spill] sm:$0xff]  ;;  %v2806_v53 = vld [vmem:[#allocation49_spill] sm:$0xff] }
 0x2da   :  { %1055 = vmatpush.msra.mxu2 %v2789_v24  ;;  %1075 = vmatpush.msra.mxu3 %v2790_v28 }
 0x2db   :  { %1016 = vmatpush.msrb.mxu0 %v2791_v33  ;;  %1036 = vmatpush.msra.mxu1 %v2792_v6  ;;  %v2803_v6 = vld [vmem:[#allocation44_spill] sm:$0xff]  ;;  %v2804_v33 = vld [vmem:[#allocation47_spill] sm:$0xff] }
 0x2dc   :  { %1056 = vmatpush.msra.mxu2 %v2793_v10  ;;  %1076 = vmatpush.msra.mxu3 %v2400_v55  ;;  %v2412_v10 = vld [vmem:[#allocation3 + $0x18] sm:$0xff] }
 0x2dd   :  { %1017 = vmatpush.msrb.mxu0 %v2795_v11  ;;  %1037 = vmatpush.msra.mxu1 %v2796_v62  ;;  %2802 = vst [vmem:[#allocation22_spill] sm:$0xff] %v2412_v10 }
 0x2de   :  { %1057 = vmatpush.msra.mxu2 %v2797_v3  ;;  %1077 = vmatpush.msra.mxu3 %v2406_v54 }
 0x2df   :  { %1018 = vmatpush.msrb.mxu0 %v2799_v52  ;;  %1038 = vmatpush.msra.mxu1 %v2800_v63 }
 0x2e0   :  { %1058 = vmatpush.msra.mxu2 %v2801_v51  ;;  %1078 = vmatpush.msra.mxu3 %v2412_v10 }
 0x33c   :  { %v808_v55 = vpop.f32.mrf.mxu0  ;;  %v828_v11 = vpop.f32.mrf.mxu1 }
 0x33d   :  { %v871_v62 = vadd.f32 %v808_v55, %v2803_v6  ;;  %v872_v3 = vadd.f32 %v828_v11, %v2804_v33 }
 0x33f   :  { %v875_v28 = vmul.f32 0.5, %v871_v62  ;;  %v879_v24 = vmul.f32 0.5, %v872_v3 }
 0x341   :  { %1344 = vtanh.f32 %v875_v28 }
 0x342   :  { %1346 = vtanh.f32 %v879_v24 }
 0x343   :  { %v848_v54 = vpop.f32.mrf.mxu2  ;;  %v868_v52 = vpop.f32.mrf.mxu3 }
 0x344   :  { %v873_v63 = vadd.f32 %v848_v54, %v2805_v31  ;;  %v874_v51 = vadd.f32 %v868_v52, %v2806_v53  ;;  %v1226_v52 = vld [vmem:[%s2558_s4 + $0x78] sm:$0xff] }
 0x346   :  { %1348 = vtanh.f32 %v873_v63  ;;  %v884_v50 = vmul.f32 0.5, %v874_v51 }
 0x347   :  { %v1345_v49 = vpop.eup %1344 }
 0x348   :  { %v1347_v10 = vpop.eup %1346  ;;  %v877_v48 = vmul.f32 0.5, %v1345_v49  ;;  %1350 = vtanh.f32 %v884_v50 }
 0x349   :  { %v881_v5 = vmul.f32 0.5, %v1347_v10 }
 0x34a   :  { %v878_v6 = vadd.f32 0.5, %v877_v48 }
 0x34b   :  { %v882_v55 = vadd.f32 0.5, %v881_v5 }
 0x34c   :  { %v1349_v33 = vpop.eup %1348 }
 0x34d   :  { %v888_v11 = vmul.f32 %v882_v55, %v2342_v60  ;;  %v889_v28 = vmul.f32 %v1349_v33, %v878_v6  ;;  %v2831_v6 = vld [vmem:[#allocation32_spill] sm:$0xff]  ;;  %v2832_v33 = vld [vmem:[#allocation53_spill] sm:$0xff] }
 0x34e   :  { %v1351_v24 = vpop.eup %1350 }
 0x34f   :  { %v2420_v62 = vadd.f32 %v889_v28, %v888_v11  ;;  %v886_v31 = vmul.f32 0.5, %v1351_v24 }
 0x351   :  { %1352 = vtanh.f32 %v2420_v62  ;;  %v887_v53 = vadd.f32 0.5, %v886_v31 }
 0x357   :  { %v1353_v3 = vpop.eup %1352 }
 0x358   :  { %v892_v54 = vmul.f32 %v1353_v3, %v887_v53  ;;  %v2833_v53 = vld [vmem:[#allocation54_spill] sm:$0xff] }
 0x35a   :  { %913 = vmatmul.f32.vlgmr.msra.gmra.mxu0 %v892_v54  ;;  %933 = vmatmul.f32.vlgmr.msrb.gmra.mxu1 %v892_v54 }
 0x35b   :  { %953 = vmatmul.f32.vlgmr.msrb.gmra.mxu2 %v892_v54  ;;  %973 = vmatmul.f32.vlgmr.msrb.gmra.mxu3 %v892_v54  ;;  %v2834_v54 = vld [vmem:[#allocation55_spill] sm:$0xff] }
 0x35c   :  { %1109 = vmatpush.msra.mxu0 %v2151_v7  ;;  %1129 = vmatpush.msrb.mxu1 %v2154_v18  ;;  %v2807_v7 = vld [vmem:[#allocation8_spill] sm:$0xff]  ;;  %v2808_v18 = vld [vmem:[#allocation6_spill] sm:$0xff] }
 0x35d   :  { %1149 = vmatpush.msrb.mxu2 %v2157_v4  ;;  %1169 = vmatpush.msrb.mxu3 %v2160_v0  ;;  %v2809_v4 = vld [vmem:[#allocation7_spill] sm:$0xff] }
 0x35e   :  { %1110 = vmatpush.msra.mxu0 %v2163_v44  ;;  %1130 = vmatpush.msrb.mxu1 %v2166_v59  ;;  %v2810_v0 = vld [vmem:[#allocation11_spill] sm:$0xff]  ;;  %v2811_v44 = vld [vmem:[#allocation14_spill] sm:$0xff] }
 0x35f   :  { %1150 = vmatpush.msrb.mxu2 %v2169_v57  ;;  %1170 = vmatpush.msrb.mxu3 %v2172_v58  ;;  %v2812_v59 = vld [vmem:[#allocation34_spill] sm:$0xff]  ;;  %v2813_v57 = vld [vmem:[#allocation36_spill] sm:$0xff]  ;;  %v2814_v58 = vld [vmem:[#allocation37_spill] sm:$0xff] }
 0x360   :  { %1111 = vmatpush.msra.mxu0 %v2175_v2  ;;  %1131 = vmatpush.msrb.mxu1 %v2178_v61  ;;  %v2815_v2 = vld [vmem:[#allocation38_spill] sm:$0xff]  ;;  %v2816_v61 = vld [vmem:[#allocation9_spill] sm:$0xff] }
 0x361   :  { %1151 = vmatpush.msrb.mxu2 %v2181_v12  ;;  %1171 = vmatpush.msrb.mxu3 %v2184_v8  ;;  %v2817_v12 = vld [vmem:[#allocation12_spill] sm:$0xff]  ;;  %v2818_v8 = vld [vmem:[#allocation13_spill] sm:$0xff] }
 0x362   :  { %1112 = vmatpush.msra.mxu0 %v2187_v1  ;;  %1132 = vmatpush.msrb.mxu1 %v2190_v56  ;;  %v2819_v1 = vld [vmem:[#allocation15_spill] sm:$0xff]  ;;  %v2820_v56 = vld [vmem:[#allocation18_spill] sm:$0xff] }
 0x363   :  { %1152 = vmatpush.msrb.mxu2 %v2193_v9  ;;  %1172 = vmatpush.msrb.mxu3 %v2196_v13  ;;  %v2821_v9 = vld [vmem:[#allocation10_spill] sm:$0xff]  ;;  %v2822_v13 = vld [vmem:[#allocation20_spill] sm:$0xff] }
 0x364   :  { %1113 = vmatpush.msra.mxu0 %v2199_v14  ;;  %1133 = vmatpush.msrb.mxu1 %v2202_v15  ;;  %v2823_v14 = vld [vmem:[#allocation16_spill] sm:$0xff]  ;;  %v2824_v15 = vld [vmem:[#allocation19_spill] sm:$0xff] }
 0x365   :  { %1153 = vmatpush.msrb.mxu2 %v2205_v16  ;;  %1173 = vmatpush.msrb.mxu3 %v2208_v17  ;;  %v2825_v16 = vld [vmem:[#allocation23_spill] sm:$0xff]  ;;  %v2826_v17 = vld [vmem:[#allocation22_spill] sm:$0xff] }
 0x366   :  { %1114 = vmatpush.msra.mxu0 %v2211_v19  ;;  %1134 = vmatpush.msrb.mxu1 %v2214_v20 }
 0x367   :  { %1154 = vmatpush.msrb.mxu2 %v2217_v21  ;;  %1174 = vmatpush.msrb.mxu3 %v2220_v22  ;;  %v2827_v21 = vld [vmem:[#allocation31_spill] sm:$0xff] }
 0x368   :  { %1115 = vmatpush.msra.mxu0 %v2223_v23  ;;  %1135 = vmatpush.msrb.mxu1 %v2226_v25  ;;  %v2828_v23 = vld [vmem:[#allocation50_spill] sm:$0xff] }
 0x369   :  { %1155 = vmatpush.msrb.mxu2 %v2229_v26  ;;  %1175 = vmatpush.msrb.mxu3 %v2232_v27 }
 0x36a   :  { %1116 = vmatpush.msra.mxu0 %v2235_v29  ;;  %1136 = vmatpush.msrb.mxu1 %v2238_v30 }
 0x36b   :  { %1156 = vmatpush.msrb.mxu2 %v2241_v32  ;;  %1176 = vmatpush.msrb.mxu3 %v2244_v34  ;;  %v2829_v32 = vld [vmem:[#allocation51_spill] sm:$0xff] }
 0x36c   :  { %1117 = vmatpush.msra.mxu0 %v2247_v35  ;;  %1137 = vmatpush.msrb.mxu1 %v2250_v36  ;;  %v2830_v35 = vld [vmem:[#allocation52_spill] sm:$0xff] }
 0x36d   :  { %1157 = vmatpush.msrb.mxu2 %v2253_v37  ;;  %1177 = vmatpush.msrb.mxu3 %v2256_v38 }
 0x36e   :  { %1118 = vmatpush.msra.mxu0 %v2259_v39  ;;  %1138 = vmatpush.msrb.mxu1 %v2262_v40 }
 0x36f   :  { %1158 = vmatpush.msrb.mxu2 %v2265_v41  ;;  %1178 = vmatpush.msrb.mxu3 %v2268_v42 }
 0x370   :  { %1119 = vmatpush.msra.mxu0 %v2271_v43  ;;  %1139 = vmatpush.msrb.mxu1 %v2274_v45 }
 0x371   :  { %1159 = vmatpush.msrb.mxu2 %v2277_v46  ;;  %1179 = vmatpush.msrb.mxu3 %v2280_v47 }
 0x372   :  { %1120 = vmatpush.msra.mxu0 %v2807_v7  ;;  %1140 = vmatpush.msrb.mxu1 %v2808_v18 }
 0x373   :  { %1160 = vmatpush.msrb.mxu2 %v2809_v4  ;;  %1180 = vmatpush.msrb.mxu3 %v2810_v0 }
 0x374   :  { %1121 = vmatpush.msra.mxu0 %v2811_v44  ;;  %1141 = vmatpush.msrb.mxu1 %v2812_v59 }
 0x375   :  { %1161 = vmatpush.msrb.mxu2 %v2813_v57  ;;  %1181 = vmatpush.msrb.mxu3 %v2814_v58 }
 0x376   :  { %1122 = vmatpush.msra.mxu0 %v2815_v2  ;;  %1142 = vmatpush.msrb.mxu1 %v2816_v61 }
 0x377   :  { %1162 = vmatpush.msrb.mxu2 %v2817_v12  ;;  %1182 = vmatpush.msrb.mxu3 %v2818_v8 }
 0x378   :  { %1123 = vmatpush.msra.mxu0 %v2819_v1  ;;  %1143 = vmatpush.msrb.mxu1 %v2820_v56 }
 0x379   :  { %1163 = vmatpush.msrb.mxu2 %v2821_v9  ;;  %1183 = vmatpush.msrb.mxu3 %v2822_v13 }
 0x37a   :  { %1124 = vmatpush.msra.mxu0 %v2823_v14  ;;  %1144 = vmatpush.msrb.mxu1 %v2824_v15  ;;  %v1225_v15 = vld [vmem:[%s2558_s4 + $0x70] sm:$0xff] }
 0x37b   :  { %1164 = vmatpush.msrb.mxu2 %v2825_v16  ;;  %1184 = vmatpush.msrb.mxu3 %v2826_v17  ;;  %v1224_v16 = vld [vmem:[%s2558_s4 + $0x68] sm:$0xff]  ;;  %v1223_v17 = vld [vmem:[%s2558_s4 + $0x60] sm:$0xff] }
 0x3d7   :  { %v914_v19 = vpop.f32.mrf.mxu0  ;;  %v934_v20 = vpop.f32.mrf.mxu1 }
 0x3d8   :  { %v977_v22 = vadd.f32 %v914_v19, %v2827_v21  ;;  %v978_v25 = vadd.f32 %v934_v20, %v2828_v23  ;;  %v1222_v19 = vld [vmem:[%s2558_s4 + $0x58] sm:$0xff]  ;;  %v1221_v20 = vld [vmem:[%s2558_s4 + $0x50] sm:$0xff]  ;;  %v1220_v21 = vld [vmem:[%s2558_s4 + $0x48] sm:$0xff] }
 0x3d9   :  { %v1218_v23 = vld [vmem:[%s2558_s4 + $0x38] sm:$0xff] }
 0x3da   :  { %v981_v26 = vmul.f32 0.5, %v977_v22  ;;  %v985_v27 = vmul.f32 0.5, %v978_v25  ;;  %v1219_v22 = vld [vmem:[%s2558_s4 + $0x40] sm:$0xff]  ;;  %v1217_v25 = vld [vmem:[%s2558_s4 + $0x30] sm:$0xff] }
 0x3dc   :  { %1354 = vtanh.f32 %v981_v26  ;;  %v1216_v26 = vld [vmem:[%s2558_s4 + $0x28] sm:$0xff] }
 0x3dd   :  { %1356 = vtanh.f32 %v985_v27  ;;  %v1215_v27 = vld [vmem:[%s2558_s4 + $0x20] sm:$0xff] }
 0x3de   :  { %v954_v29 = vpop.f32.mrf.mxu2  ;;  %v974_v30 = vpop.f32.mrf.mxu3 }
 0x3df   :  { %v979_v34 = vadd.f32 %v954_v29, %v2829_v32  ;;  %v980_v36 = vadd.f32 %v974_v30, %v2830_v35  ;;  %v1214_v29 = vld [vmem:[%s2558_s4 + $0x18] sm:$0xff]  ;;  %v1213_v30 = vld [vmem:[%s2558_s4 + $0x10] sm:$0xff]  ;;  %v1212_v32 = vld [vmem:[%s2558_s4 + $0x8] sm:$0xff] }
 0x3e1   :  { %1358 = vtanh.f32 %v979_v34  ;;  %v990_v37 = vmul.f32 0.5, %v980_v36  ;;  %v1211_v34 = vld [vmem:[%s2558_s4] sm:$0xff] }
 0x3e2   :  { %v1355_v38 = vpop.eup %1354 }
 0x3e3   :  { %v1357_v39 = vpop.eup %1356  ;;  %v983_v40 = vmul.f32 0.5, %v1355_v38  ;;  %1360 = vtanh.f32 %v990_v37  ;;  %v2835_v37 = vld [vmem:[#allocation33_spill] sm:$0xff] }
 0x3e4   :  { %v987_v41 = vmul.f32 0.5, %v1357_v39  ;;  %v2836_v39 = vld [vmem:[#allocation56_spill] sm:$0xff] }
 0x3e5   :  { %v984_v42 = vadd.f32 0.5, %v983_v40 }
 0x3e6   :  { %v988_v43 = vadd.f32 0.5, %v987_v41 }
 0x3e7   :  { %v1359_v45 = vpop.eup %1358 }
 0x3e8   :  { %v994_v46 = vmul.f32 %v988_v43, %v2420_v62  ;;  %v995_v47 = vmul.f32 %v1359_v45, %v984_v42 }
 0x3e9   :  { %v1361_v60 = vpop.eup %1360 }
 0x3ea   :  { %v996_v5 = vadd.f32 %v995_v47, %v994_v46  ;;  %v992_v48 = vmul.f32 0.5, %v1361_v60  ;;  %v2837_v46 = vld [vmem:[#allocation57_spill] sm:$0xff]  ;;  %v2838_v60 = vld [vmem:[#allocation58_spill] sm:$0xff] }
 0x3ec   :  { %1362 = vtanh.f32 %v996_v5  ;;  %v993_v49 = vadd.f32 0.5, %v992_v48 }
 0x3f2   :  { %v1363_v50 = vpop.eup %1362 }
 0x3f3   :  { %v998_v10 = vmul.f32 %v1363_v50, %v993_v49 }
 0x3f5   :  { %1019 = vmatmul.f32.vlgmr.msrb.gmra.mxu0 %v998_v10  ;;  %1039 = vmatmul.f32.vlgmr.msra.gmra.mxu1 %v998_v10 }
 0x3f6   :  { %1059 = vmatmul.f32.vlgmr.msra.gmra.mxu2 %v998_v10  ;;  %1079 = vmatmul.f32.vlgmr.msra.gmra.mxu3 %v998_v10 }
 0x3f7   :  { %1231 = vmatpush.msrb.mxu0 %v1226_v52 }
 0x3f9   :  { %1232 = vmatpush.msrb.mxu0 %v1225_v15 }
 0x3fb   :  { %1233 = vmatpush.msrb.mxu0 %v1224_v16 }
 0x3fd   :  { %1234 = vmatpush.msrb.mxu0 %v1223_v17 }
 0x3ff   :  { %1235 = vmatpush.msrb.mxu0 %v1222_v19 }
 0x401   :  { %1236 = vmatpush.msrb.mxu0 %v1221_v20 }
 0x403   :  { %1237 = vmatpush.msrb.mxu0 %v1220_v21 }
 0x405   :  { %1238 = vmatpush.msrb.mxu0 %v1219_v22 }
 0x407   :  { %1239 = vmatpush.msrb.mxu0 %v1218_v23 }
 0x409   :  { %1240 = vmatpush.msrb.mxu0 %v1217_v25 }
 0x40b   :  { %1241 = vmatpush.msrb.mxu0 %v1216_v26 }
 0x40d   :  { %1242 = vmatpush.msrb.mxu0 %v1215_v27 }
 0x40f   :  { %1243 = vmatpush.msrb.mxu0 %v1214_v29 }
 0x411   :  { %1244 = vmatpush.msrb.mxu0 %v1213_v30 }
 0x413   :  { %1245 = vmatpush.msrb.mxu0 %v1212_v32 }
 0x415   :  { %1246 = vmatpush.msrb.mxu0 %v1211_v34 }
 0x472   :  { %v1020_v63 = vpop.f32.mrf.mxu0  ;;  %v1040_v51 = vpop.f32.mrf.mxu1 }
 0x473   :  { %v1083_v55 = vadd.f32 %v1020_v63, %v2831_v6  ;;  %v1084_v11 = vadd.f32 %v1040_v51, %v2832_v33 }
 0x475   :  { %v1087_v28 = vmul.f32 0.5, %v1083_v55  ;;  %v1091_v24 = vmul.f32 0.5, %v1084_v11 }
 0x477   :  { %1364 = vtanh.f32 %v1087_v28 }
 0x478   :  { %1366 = vtanh.f32 %v1091_v24 }
 0x479   :  { %v1060_v62 = vpop.f32.mrf.mxu2  ;;  %v1080_v31 = vpop.f32.mrf.mxu3 }
 0x47a   :  { %v1085_v3 = vadd.f32 %v1060_v62, %v2833_v53  ;;  %v1086_v7 = vadd.f32 %v1080_v31, %v2834_v54 }
 0x47c   :  { %1368 = vtanh.f32 %v1085_v3  ;;  %v1096_v18 = vmul.f32 0.5, %v1086_v7  ;;  %v1303_v3 = vld [vmem:[%s2559_s5] ss:$0 sm:$0xff] }
 0x47d   :  { %v1365_v4 = vpop.eup %1364 }
 0x47e   :  { %v1367_v0 = vpop.eup %1366  ;;  %v1089_v44 = vmul.f32 0.5, %v1365_v4  ;;  %1370 = vtanh.f32 %v1096_v18 }
 0x47f   :  { %v1093_v59 = vmul.f32 0.5, %v1367_v0 }
 0x480   :  { %v1090_v57 = vadd.f32 0.5, %v1089_v44 }
 0x481   :  { %v1094_v58 = vadd.f32 0.5, %v1093_v59 }
 0x482   :  { %v1369_v2 = vpop.eup %1368 }
 0x483   :  { %v1100_v61 = vmul.f32 %v1094_v58, %v996_v5  ;;  %v1101_v12 = vmul.f32 %v1369_v2, %v1090_v57 }
 0x484   :  { %v1371_v8 = vpop.eup %1370 }
 0x485   :  { %v1102_v1 = vadd.f32 %v1101_v12, %v1100_v61  ;;  %v1098_v56 = vmul.f32 0.5, %v1371_v8 }
 0x487   :  { %1372 = vtanh.f32 %v1102_v1  ;;  %v1099_v9 = vadd.f32 0.5, %v1098_v56 }
 0x48d   :  { %v1373_v13 = vpop.eup %1372 }
 0x48e   :  { %v1104_v14 = vmul.f32 %v1373_v13, %v1099_v9 }
 0x490   :  { %1125 = vmatmul.f32.vlgmr.msra.gmra.mxu0 %v1104_v14  ;;  %1145 = vmatmul.f32.vlgmr.msrb.gmra.mxu1 %v1104_v14 }
 0x491   :  { %1165 = vmatmul.f32.vlgmr.msrb.gmra.mxu2 %v1104_v14  ;;  %1185 = vmatmul.f32.vlgmr.msrb.gmra.mxu3 %v1104_v14 }
 0x50d   :  { %v1126_v35 = vpop.f32.mrf.mxu0  ;;  %v1146_v36 = vpop.f32.mrf.mxu1 }
 0x50e   :  { %v1189_v38 = vadd.f32 %v1126_v35, %v2835_v37  ;;  %v1190_v40 = vadd.f32 %v1146_v36, %v2836_v39 }
 0x510   :  { %v1193_v41 = vmul.f32 0.5, %v1189_v38  ;;  %v1197_v42 = vmul.f32 0.5, %v1190_v40 }
 0x512   :  { %1374 = vtanh.f32 %v1193_v41 }
 0x513   :  { %1376 = vtanh.f32 %v1197_v42 }
 0x514   :  { %v1166_v43 = vpop.f32.mrf.mxu2  ;;  %v1186_v45 = vpop.f32.mrf.mxu3 }
 0x515   :  { %v1191_v47 = vadd.f32 %v1166_v43, %v2837_v46  ;;  %v1192_v5 = vadd.f32 %v1186_v45, %v2838_v60 }
 0x517   :  { %1378 = vtanh.f32 %v1191_v47  ;;  %v1202_v48 = vmul.f32 0.5, %v1192_v5 }
 0x518   :  { %v1375_v49 = vpop.eup %1374 }
 0x519   :  { %v1377_v50 = vpop.eup %1376  ;;  %v1195_v10 = vmul.f32 0.5, %v1375_v49  ;;  %1380 = vtanh.f32 %v1202_v48 }
 0x51a   :  { %v1199_v52 = vmul.f32 0.5, %v1377_v50 }
 0x51b   :  { %v1196_v63 = vadd.f32 0.5, %v1195_v10 }
 0x51c   :  { %v1200_v51 = vadd.f32 0.5, %v1199_v52 }
 0x51d   :  { %v1379_v6 = vpop.eup %1378 }
 0x51e   :  { %v1206_v55 = vmul.f32 %v1200_v51, %v1102_v1  ;;  %v1207_v33 = vmul.f32 %v1379_v6, %v1196_v63 }
 0x51f   :  { %v1381_v11 = vpop.eup %1380 }
 0x520   :  { %v1208_v28 = vadd.f32 %v1207_v33, %v1206_v55  ;;  %v1204_v24 = vmul.f32 0.5, %v1381_v11 }
 0x522   :  { %1382 = vtanh.f32 %v1208_v28  ;;  %v1205_v62 = vadd.f32 0.5, %v1204_v24 }
 0x528   :  { %v1383_v31 = vpop.eup %1382 }
 0x529   :  { %v1210_v53 = vmul.f32 %v1383_v31, %v1205_v62 }
 0x52b   :  { %1247 = vmatmul.f32.vlgmr.msrb.gmra.mxu0 %v1210_v53 }
 0x5a8   :  { %v1248_v54 = vpop.f32.mrf.mxu0 }
 0x5a9   :  { %v1249_v7 = vadd.f32 %v1303_v3, %v1248_v54 }
 0x5ab   :  { %1251 = vst [vmem:[%s2560_s6] sm:$0xff] %v1249_v7 }
 0x5ac   :  { %1256 = vsyncpa [#allocation4], 1 }

</bundles_post_ra>
